<compile_context>
chip_gen: v6e
topology: v6e:2x2x1
jax: 0.10.0
libtpu: 0.0.40
codegen_flags: <defaults>
</compile_context>

<pallas_src>
import math
import jax
import jax.numpy as jnp
from jax.experimental import pallas as pl
from jax.experimental.pallas import tpu as pltpu

D_MODEL = 32
NUM_HEADS = 4
D_HEAD = D_MODEL // NUM_HEADS
D_FF = 64
EPS = 1e-5  # nn.LayerNorm default eps
VEC_W = max(3 * D_MODEL, D_FF)  # 96: width of the packed vector slab

# Rows of the packed vector slab (12, VEC_W):
#   0: self-attn QKV bias (3D)      1: cross-attn QKV bias (3D)
#   2: self-attn out bias (D)       3: cross-attn out bias (D)
#   4: FFN b1 (FF)                  5: FFN b2 (D)
#   6: g1   7: bt1   8: g2   9: bt2   10: g3   11: bt3


# ---------------- the Pallas kernel ----------------

def decoder_layer_kernel(
    x_ref, enc_ref, tgt_mask_ref, src_mask_ref,
    w_qkv_ref, w_o_ref, w1_ref, w2_ref, vec_ref,
    out_ref,
):
    x = x_ref[0]               # (T, D)
    enc = enc_ref[0]           # (S, D)
    vecs = vec_ref[...]        # (12, VEC_W)

    # Hoisted additive masks (computed once per attention, not per head).
    tgt_add = jnp.where(tgt_mask_ref[0] == 0, -1e9, 0.0).astype(jnp.float32)  # (T, T)
    src_add = jnp.where(src_mask_ref[0] == 0, -1e9, 0.0).astype(jnp.float32)  # (1, S)

    scale = 1.0 / math.sqrt(D_HEAD)

    def mha(q_in, kv_in, add_mask, a):
        w = w_qkv_ref[a]            # (D, 3D) fused [Wq | Wk | Wv]
        b = vecs[a:a + 1, :]        # (1, 3D)
        if q_in is kv_in:
            # Self-attention: one fused QKV matmul.
            qkv = jnp.dot(q_in, w, preferred_element_type=jnp.float32) + b
            q = qkv[:, :D_MODEL]
            k = qkv[:, D_MODEL:2 * D_MODEL]
            v = qkv[:, 2 * D_MODEL:]
        else:
            # Cross-attention: Q from decoder state, fused KV from encoder output.
            q = jnp.dot(q_in, w[:, :D_MODEL],
                        preferred_element_type=jnp.float32) + b[:, :D_MODEL]
            kv = jnp.dot(kv_in, w[:, D_MODEL:],
                         preferred_element_type=jnp.float32) + b[:, D_MODEL:]
            k = kv[:, :D_MODEL]
            v = kv[:, D_MODEL:]

        Tq, Tk = q.shape[0], k.shape[0]
        q3 = q.reshape(Tq, NUM_HEADS, D_HEAD)
        k3 = k.reshape(Tk, NUM_HEADS, D_HEAD)
        v3 = v.reshape(Tk, NUM_HEADS, D_HEAD)

        # Batched over heads: one QK^T and one PV push (no per-head loop).
        scores = jnp.einsum('qhd,khd->hqk', q3, k3,
                            preferred_element_type=jnp.float32) * scale   # (H, Tq, Tk)
        scores = scores + add_mask[None, :, :]

        m = jnp.max(scores, axis=-1, keepdims=True)
        e = jnp.exp(scores - m)
        inv = pl.reciprocal(jnp.sum(e, axis=-1, keepdims=True), approx=True)
        p = e * inv

        ctx = jnp.einsum('hqk,khd->qhd', p, v3,
                         preferred_element_type=jnp.float32)              # (Tq, H, Dh)
        ctx = ctx.reshape(Tq, D_MODEL)

        return (jnp.dot(ctx, w_o_ref[a], preferred_element_type=jnp.float32)
                + vecs[2 + a:3 + a, :D_MODEL])

    def layer_norm(v, row):
        g = vecs[row:row + 1, :D_MODEL]
        bt = vecs[row + 1:row + 2, :D_MODEL]
        mu = jnp.mean(v, axis=-1, keepdims=True)
        var = jnp.mean((v - mu) ** 2, axis=-1, keepdims=True)
        return (v - mu) * jax.lax.rsqrt(var + EPS) * g + bt

    # 1) masked self-attention + residual + LayerNorm (dropout = identity)
    sa = mha(x, x, tgt_add, 0)
    x1 = layer_norm(x + sa, 6)

    # 2) cross-attention over encoder output + residual + LayerNorm
    ca = mha(x1, enc, src_add, 1)
    x2 = layer_norm(x1 + ca, 8)

    # 3) position-wise feed-forward + residual + LayerNorm
    h = jnp.maximum(
        jnp.dot(x2, w1_ref[...], preferred_element_type=jnp.float32)
        + vecs[4:5, :D_FF], 0.0)
    ff = jnp.dot(h, w2_ref[...], preferred_element_type=jnp.float32) + vecs[5:6, :D_MODEL]
    out_ref[0] = layer_norm(x2 + ff, 10)

    # TODO(synk): dropout is treated as identity (inference mode); training-mode
    # dropout would need pltpu.prng_seed / prng_random_bits.


# ---------------- parameter packing + wrapper ----------------

def pack_params(p):
    w_qkv = jnp.stack([
        jnp.concatenate([p["s_wq"], p["s_wk"], p["s_wv"]], axis=1),
        jnp.concatenate([p["c_wq"], p["c_wk"], p["c_wv"]], axis=1),
    ])                                               # (2, D, 3D)
    w_o = jnp.stack([p["s_wo"], p["c_wo"]])          # (2, D, D)
    w1 = p["w1"]                                     # (D, FF)
    w2 = p["w2"]                                     # (FF, D)

    def pad_row(v):
        v = v.reshape(1, -1)
        return jnp.pad(v, ((0, 0), (0, VEC_W - v.shape[1])))

    vec_rows = [
        jnp.concatenate([p["s_bq"], p["s_bk"], p["s_bv"]], axis=1),
        jnp.concatenate([p["c_bq"], p["c_bk"], p["c_bv"]], axis=1),
        p["s_bo"], p["c_bo"], p["b1"], p["b2"],
        p["g1"], p["bt1"], p["g2"], p["bt2"], p["g3"], p["bt3"],
    ]
    vecs = jnp.concatenate([pad_row(r) for r in vec_rows], axis=0)  # (12, VEC_W)
    return w_qkv, w_o, w1, w2, vecs


def decoder_layer(x, enc, tgt_mask, src_mask, params):
    B, T, D = x.shape
    w_qkv, w_o, w1, w2, vecs = pack_params(params)

    def batched(shape):
        nd = len(shape)
        return pl.BlockSpec((1,) + tuple(shape[1:]),
                            lambda b, _n=nd: (b,) + (0,) * (_n - 1))

    def replicated(arr):
        nd = arr.ndim
        # Constant index_map -> parameters are DMA'd once, not per grid step.
        return pl.BlockSpec(arr.shape, lambda b, _n=nd: (0,) * _n)

    in_specs = [
        batched(x.shape),
        batched(enc.shape),
        batched(tgt_mask.shape),
        batched(src_mask.shape),
        replicated(w_qkv),
        replicated(w_o),
        replicated(w1),
        replicated(w2),
        replicated(vecs),
    ]
    out_spec = pl.BlockSpec((1, T, D), lambda b: (b, 0, 0))

    return pl.pallas_call(
        decoder_layer_kernel,
        out_shape=jax.ShapeDtypeStruct((B, T, D), jnp.float32),
        grid=(B,),
        in_specs=in_specs,
        out_specs=out_spec,
        compiler_params=pltpu.CompilerParams(
            dimension_semantics=("parallel",)),
    )(x, enc, tgt_mask, src_mask, w_qkv, w_o, w1, w2, vecs)


# ---------------- pure-JAX reference (for correctness check) ----------------

def ref_decoder_layer(x, enc, tgt_mask, src_mask, p):
    def linear(v, w, b):
        return v @ w + b

    def ln(v, g, b):
        mu = v.mean(-1, keepdims=True)
        var = ((v - mu) ** 2).mean(-1, keepdims=True)
        return (v - mu) / jnp.sqrt(var + EPS) * g + b

    def mha(q_in, kv_in, mask4, pre):
        B = q_in.shape[0]
        def split(t):
            return t.reshape(B, -1, NUM_HEADS, D_HEAD).transpose(0, 2, 1, 3)
        Q = split(linear(q_in, p[pre + "wq"], p[pre + "bq"]))
        K = split(linear(kv_in, p[pre + "wk"], p[pre + "bk"]))
        V = split(linear(kv_in, p[pre + "wv"], p[pre + "bv"]))
        scores = jnp.einsum("bhqd,bhkd->bhqk", Q, K) / math.sqrt(D_HEAD)
        scores = jnp.where(mask4 == 0, -1e9, scores)
        w = jax.nn.softmax(scores, -1)
        o = jnp.einsum("bhqk,bhkd->bhqd", w, V).transpose(0, 2, 1, 3).reshape(B, -1, D_MODEL)
        return linear(o, p[pre + "wo"], p[pre + "bo"])

    sa = mha(x, x, tgt_mask[:, None], "s_")
    x1 = ln(x + sa, p["g1"], p["bt1"])
    ca = mha(x1, enc, src_mask[:, None], "c_")
    x2 = ln(x1 + ca, p["g2"], p["bt2"])
    ff = linear(jnp.maximum(linear(x2, p["w1"], p["b1"]), 0.0), p["w2"], p["b2"])
    return ln(x2 + ff, p["g3"], p["bt3"])


# ---------------- parameter init ----------------

def init_params(key):
    p = {}
    def nxt():
        nonlocal key
        key, sub = jax.random.split(key)
        return sub

    for pre in ("s_", "c_"):
        for name in ("q", "k", "v", "o"):
            p[pre + "w" + name] = 0.1 * jax.random.normal(nxt(), (D_MODEL, D_MODEL), jnp.float32)
            p[pre + "b" + name] = 0.1 * jax.random.normal(nxt(), (1, D_MODEL), jnp.float32)
    p["w1"] = 0.1 * jax.random.normal(nxt(), (D_MODEL, D_FF), jnp.float32)
    p["b1"] = 0.1 * jax.random.normal(nxt(), (1, D_FF), jnp.float32)
    p["w2"] = 0.1 * jax.random.normal(nxt(), (D_FF, D_MODEL), jnp.float32)
    p["b2"] = 0.1 * jax.random.normal(nxt(), (1, D_MODEL), jnp.float32)
    for i in (1, 2, 3):
        p[f"g{i}"] = jnp.ones((1, D_MODEL), jnp.float32)
        p[f"bt{i}"] = jnp.zeros((1, D_MODEL), jnp.float32)
    return p


if __name__ == "__main__":
    key = jax.random.PRNGKey(0)
    B, T, S = 2, 8, 8

    k1, k2, kp = jax.random.split(key, 3)
    x = jax.random.normal(k1, (B, T, D_MODEL), jnp.float32)
    enc = jax.random.normal(k2, (B, S, D_MODEL), jnp.float32)

    # causal target mask (B, T, T); source padding mask (B, 1, S)
    tgt_mask = jnp.broadcast_to(jnp.tril(jnp.ones((T, T), jnp.float32)), (B, T, T))
    src_mask = jnp.ones((B, 1, S), jnp.float32).at[1, 0, -2:].set(0.0)

    params = init_params(kp)

    out = decoder_layer(x, enc, tgt_mask, src_mask, params)
    out = jax.block_until_ready(out)

    ref = ref_decoder_layer(x, enc, tgt_mask, src_mask, params)
    assert out.shape == (B, T, D_MODEL)
    # Tolerance is slightly looser than pure-f32 because the softmax denominator
    # uses the EUP approximate reciprocal (pl.reciprocal(..., approx=True)).
    assert jnp.allclose(out, ref, atol=2e-3, rtol=2e-3), float(jnp.max(jnp.abs(out - ref)))

    print("KERNEL_OK")
</pallas_src>

<mosaic_0001>
module attributes {stable_mosaic.version = 11 : i64} {
  func.func @decoder_layer_kernel(%arg0: i32, %arg1: memref<1x8x32xf32, #tpu.memory_space<vmem>>, %arg2: memref<1x8x32xf32, #tpu.memory_space<vmem>>, %arg3: memref<1x8x8xf32, #tpu.memory_space<vmem>>, %arg4: memref<1x1x8xf32, #tpu.memory_space<vmem>>, %arg5: memref<2x32x96xf32, #tpu.memory_space<vmem>>, %arg6: memref<2x32x32xf32, #tpu.memory_space<vmem>>, %arg7: memref<32x64xf32, #tpu.memory_space<vmem>>, %arg8: memref<64x32xf32, #tpu.memory_space<vmem>>, %arg9: memref<12x96xf32, #tpu.memory_space<vmem>>, %arg10: memref<1x8x32xf32, #tpu.memory_space<vmem>>) attributes {dimension_semantics = [#tpu.dimension_semantics<parallel>], iteration_bounds = array<i64: 2>, scalar_prefetch = 0 : i64, scratch_operands = 0 : i64, tpu.core_type = #tpu.core_type<tc>, window_params = [{transform_indices = @transform_0, window_bounds = array<i64: 1, 8, 32>}, {transform_indices = @transform_1, window_bounds = array<i64: 1, 8, 32>}, {transform_indices = @transform_2, window_bounds = array<i64: 1, 8, 8>}, {transform_indices = @transform_3, window_bounds = array<i64: 1, 1, 8>}, {pipeline_mode = #tpu.pipeline_mode<synchronous>, transform_indices = @transform_4, window_bounds = array<i64: 2, 32, 96>}, {pipeline_mode = #tpu.pipeline_mode<synchronous>, transform_indices = @transform_5, window_bounds = array<i64: 2, 32, 32>}, {pipeline_mode = #tpu.pipeline_mode<synchronous>, transform_indices = @transform_6, window_bounds = array<i64: 32, 64>}, {pipeline_mode = #tpu.pipeline_mode<synchronous>, transform_indices = @transform_7, window_bounds = array<i64: 64, 32>}, {pipeline_mode = #tpu.pipeline_mode<synchronous>, transform_indices = @transform_8, window_bounds = array<i64: 12, 96>}, {transform_indices = @transform_9, window_bounds = array<i64: 1, 8, 32>}]} {
    %c0 = arith.constant 0 : index
    %c0_0 = arith.constant 0 : index
    %c0_1 = arith.constant 0 : index
    %0 = vector.load %arg1[%c0, %c0_0, %c0_1] : memref<1x8x32xf32, #tpu.memory_space<vmem>>, vector<1x8x32xf32>
    %1 = vector.shape_cast %0 : vector<1x8x32xf32> to vector<8x32xf32>
    %c0_2 = arith.constant 0 : index
    %c0_3 = arith.constant 0 : index
    %c0_4 = arith.constant 0 : index
    %2 = vector.load %arg2[%c0_2, %c0_3, %c0_4] : memref<1x8x32xf32, #tpu.memory_space<vmem>>, vector<1x8x32xf32>
    %3 = vector.shape_cast %2 : vector<1x8x32xf32> to vector<8x32xf32>
    %c0_5 = arith.constant 0 : index
    %c0_6 = arith.constant 0 : index
    %4 = vector.load %arg9[%c0_5, %c0_6] : memref<12x96xf32, #tpu.memory_space<vmem>>, vector<12x96xf32>
    %c0_7 = arith.constant 0 : index
    %c0_8 = arith.constant 0 : index
    %c0_9 = arith.constant 0 : index
    %5 = vector.load %arg3[%c0_7, %c0_8, %c0_9] : memref<1x8x8xf32, #tpu.memory_space<vmem>>, vector<1x8x8xf32>
    %6 = vector.shape_cast %5 : vector<1x8x8xf32> to vector<8x8xf32>
    %cst = arith.constant 0.000000e+00 : f32
    %7 = vector.broadcast %cst : f32 to vector<8x8xf32>
    %8 = arith.cmpf oeq, %6, %7 : vector<8x8xf32>
    %cst_10 = arith.constant -1.000000e+09 : f32
    %cst_11 = arith.constant 0.000000e+00 : f32
    %9 = vector.broadcast %cst_10 : f32 to vector<8x8xf32>
    %10 = vector.broadcast %cst_11 : f32 to vector<8x8xf32>
    %11 = arith.select %8, %9, %10 : vector<8x8xi1>, vector<8x8xf32>
    %c0_12 = arith.constant 0 : index
    %c0_13 = arith.constant 0 : index
    %c0_14 = arith.constant 0 : index
    %12 = vector.load %arg4[%c0_12, %c0_13, %c0_14] : memref<1x1x8xf32, #tpu.memory_space<vmem>>, vector<1x1x8xf32>
    %13 = vector.shape_cast %12 : vector<1x1x8xf32> to vector<1x8xf32>
    %cst_15 = arith.constant 0.000000e+00 : f32
    %14 = vector.broadcast %cst_15 : f32 to vector<1x8xf32>
    %15 = arith.cmpf oeq, %13, %14 : vector<1x8xf32>
    %cst_16 = arith.constant -1.000000e+09 : f32
    %cst_17 = arith.constant 0.000000e+00 : f32
    %16 = vector.broadcast %cst_16 : f32 to vector<1x8xf32>
    %17 = vector.broadcast %cst_17 : f32 to vector<1x8xf32>
    %18 = arith.select %15, %16, %17 : vector<1x8xi1>, vector<1x8xf32>
    %c0_18 = arith.constant 0 : index
    %c0_19 = arith.constant 0 : index
    %c0_20 = arith.constant 0 : index
    %19 = vector.load %arg5[%c0_18, %c0_19, %c0_20] : memref<2x32x96xf32, #tpu.memory_space<vmem>>, vector<1x32x96xf32>
    %20 = vector.shape_cast %19 : vector<1x32x96xf32> to vector<32x96xf32>
    %21 = vector.extract_strided_slice %4 {offsets = [0, 0], sizes = [1, 96], strides = [1, 1]} : vector<12x96xf32> to vector<1x96xf32>
    %cst_21 = arith.constant dense<0.000000e+00> : vector<8x96xf32>
    %22 = tpu.matmul %1, %20, %cst_21 {dimension_numbers = #tpu.dot_dimension_numbers<[1], [0], [0], [1], [0, 0, 1, 1], [], []>} : vector<8x32xf32>, vector<32x96xf32>, vector<8x96xf32> -> vector<8x96xf32>
    %23 = vector.broadcast %21 : vector<1x96xf32> to vector<8x96xf32>
    %24 = arith.addf %22, %23 : vector<8x96xf32>
    %25 = vector.extract_strided_slice %24 {offsets = [0, 0], sizes = [8, 32], strides = [1, 1]} : vector<8x96xf32> to vector<8x32xf32>
    %26 = vector.extract_strided_slice %24 {offsets = [0, 32], sizes = [8, 32], strides = [1, 1]} : vector<8x96xf32> to vector<8x32xf32>
    %27 = vector.extract_strided_slice %24 {offsets = [0, 64], sizes = [8, 32], strides = [1, 1]} : vector<8x96xf32> to vector<8x32xf32>
    %28 = vector.shape_cast %25 : vector<8x32xf32> to vector<8x4x8xf32>
    %29 = vector.shape_cast %26 : vector<8x32xf32> to vector<8x4x8xf32>
    %30 = vector.shape_cast %27 : vector<8x32xf32> to vector<8x4x8xf32>
    "tpu.trace_start"() <{level = 10 : i32, message = "qhd,khd->hqk"}> : () -> ()
    %cst_22 = arith.constant dense<0.000000e+00> : vector<4x8x8xf32>
    %31 = tpu.matmul %28, %29, %cst_22 {dimension_numbers = #tpu.dot_dimension_numbers<[2], [2], [0], [0], [0, 1, 0, 0, 1, 0], [1], [1]>} : vector<8x4x8xf32>, vector<8x4x8xf32>, vector<4x8x8xf32> -> vector<4x8x8xf32>
    "tpu.trace_stop"() : () -> ()
    %cst_23 = arith.constant 0.353553385 : f32
    %32 = vector.broadcast %cst_23 : f32 to vector<4x8x8xf32>
    %33 = arith.mulf %31, %32 : vector<4x8x8xf32>
    %34 = vector.shape_cast %11 : vector<8x8xf32> to vector<1x8x8xf32>
    %35 = vector.broadcast %34 : vector<1x8x8xf32> to vector<4x8x8xf32>
    %36 = arith.addf %33, %35 : vector<4x8x8xf32>
    %cst_24 = arith.constant dense<0xFF800000> : vector<4x8xf32>
    %37 = vector.multi_reduction <maximumf>, %36, %cst_24 [2] : vector<4x8x8xf32> to vector<4x8xf32>
    %38 = vector.shape_cast %37 : vector<4x8xf32> to vector<4x8x1xf32>
    %39 = vector.broadcast %38 : vector<4x8x1xf32> to vector<4x8x8xf32>
    %40 = arith.subf %36, %39 : vector<4x8x8xf32>
    %41 = math.exp %40 : vector<4x8x8xf32>
    %cst_25 = arith.constant dense<0.000000e+00> : vector<4x8xf32>
    %42 = vector.multi_reduction <add>, %41, %cst_25 [2] : vector<4x8x8xf32> to vector<4x8xf32>
    %43 = vector.shape_cast %42 : vector<4x8xf32> to vector<4x8x1xf32>
    %44 = tpu.reciprocal %43 {approx = true} : vector<4x8x1xf32> -> vector<4x8x1xf32>
    %45 = vector.broadcast %44 : vector<4x8x1xf32> to vector<4x8x8xf32>
    %46 = arith.mulf %41, %45 : vector<4x8x8xf32>
    "tpu.trace_start"() <{level = 10 : i32, message = "hqk,khd->qhd"}> : () -> ()
    %cst_26 = arith.constant dense<0.000000e+00> : vector<4x8x8xf32>
    %47 = tpu.matmul %30, %46, %cst_26 {dimension_numbers = #tpu.dot_dimension_numbers<[0], [2], [2], [1], [0, 1, 0, 2, 1, 1], [1], [0]>} : vector<8x4x8xf32>, vector<4x8x8xf32>, vector<4x8x8xf32> -> vector<4x8x8xf32>
    %48 = tpu.transpose %47, [2, 0, 1] : vector<4x8x8xf32> -> vector<8x4x8xf32>
    "tpu.trace_stop"() : () -> ()
    %49 = vector.shape_cast %48 : vector<8x4x8xf32> to vector<8x32xf32>
    %c0_27 = arith.constant 0 : index
    %c0_28 = arith.constant 0 : index
    %c0_29 = arith.constant 0 : index
    %50 = vector.load %arg6[%c0_27, %c0_28, %c0_29] : memref<2x32x32xf32, #tpu.memory_space<vmem>>, vector<1x32x32xf32>
    %51 = vector.shape_cast %50 : vector<1x32x32xf32> to vector<32x32xf32>
    %cst_30 = arith.constant dense<0.000000e+00> : vector<8x32xf32>
    %52 = tpu.matmul %49, %51, %cst_30 {dimension_numbers = #tpu.dot_dimension_numbers<[1], [0], [0], [1], [0, 0, 1, 1], [], []>} : vector<8x32xf32>, vector<32x32xf32>, vector<8x32xf32> -> vector<8x32xf32>
    %53 = vector.extract_strided_slice %4 {offsets = [2, 0], sizes = [1, 32], strides = [1, 1]} : vector<12x96xf32> to vector<1x32xf32>
    %54 = vector.broadcast %53 : vector<1x32xf32> to vector<8x32xf32>
    %55 = arith.addf %52, %54 : vector<8x32xf32>
    %56 = arith.addf %1, %55 : vector<8x32xf32>
    %57 = vector.extract_strided_slice %4 {offsets = [6, 0], sizes = [1, 32], strides = [1, 1]} : vector<12x96xf32> to vector<1x32xf32>
    %58 = vector.extract_strided_slice %4 {offsets = [7, 0], sizes = [1, 32], strides = [1, 1]} : vector<12x96xf32> to vector<1x32xf32>
    %cst_31 = arith.constant dense<0.000000e+00> : vector<8xf32>
    %59 = vector.multi_reduction <add>, %56, %cst_31 [1] : vector<8x32xf32> to vector<8xf32>
    %60 = vector.shape_cast %59 : vector<8xf32> to vector<8x1xf32>
    %cst_32 = arith.constant 3.200000e+01 : f32
    %61 = vector.broadcast %cst_32 : f32 to vector<8x1xf32>
    %62 = arith.divf %60, %61 : vector<8x1xf32>
    %63 = vector.broadcast %62 : vector<8x1xf32> to vector<8x32xf32>
    %64 = arith.subf %56, %63 : vector<8x32xf32>
    %65 = arith.mulf %64, %64 : vector<8x32xf32>
    %cst_33 = arith.constant dense<0.000000e+00> : vector<8xf32>
    %66 = vector.multi_reduction <add>, %65, %cst_33 [1] : vector<8x32xf32> to vector<8xf32>
    %67 = vector.shape_cast %66 : vector<8xf32> to vector<8x1xf32>
    %cst_34 = arith.constant 3.200000e+01 : f32
    %68 = vector.broadcast %cst_34 : f32 to vector<8x1xf32>
    %69 = arith.divf %67, %68 : vector<8x1xf32>
    %70 = vector.broadcast %62 : vector<8x1xf32> to vector<8x32xf32>
    %71 = arith.subf %56, %70 : vector<8x32xf32>
    %cst_35 = arith.constant 9.99999974E-6 : f32
    %72 = vector.broadcast %cst_35 : f32 to vector<8x1xf32>
    %73 = arith.addf %69, %72 : vector<8x1xf32>
    %74 = math.rsqrt %73 : vector<8x1xf32>
    %75 = vector.broadcast %74 : vector<8x1xf32> to vector<8x32xf32>
    %76 = arith.mulf %71, %75 : vector<8x32xf32>
    %77 = vector.broadcast %57 : vector<1x32xf32> to vector<8x32xf32>
    %78 = arith.mulf %76, %77 : vector<8x32xf32>
    %79 = vector.broadcast %58 : vector<1x32xf32> to vector<8x32xf32>
    %80 = arith.addf %78, %79 : vector<8x32xf32>
    %c1 = arith.constant 1 : index
    %c0_36 = arith.constant 0 : index
    %c0_37 = arith.constant 0 : index
    %81 = vector.load %arg5[%c1, %c0_36, %c0_37] : memref<2x32x96xf32, #tpu.memory_space<vmem>>, vector<1x32x96xf32>
    %82 = vector.shape_cast %81 : vector<1x32x96xf32> to vector<32x96xf32>
    %83 = vector.extract_strided_slice %4 {offsets = [1, 0], sizes = [1, 96], strides = [1, 1]} : vector<12x96xf32> to vector<1x96xf32>
    %84 = vector.extract_strided_slice %82 {offsets = [0, 0], sizes = [32, 32], strides = [1, 1]} : vector<32x96xf32> to vector<32x32xf32>
    %cst_38 = arith.constant dense<0.000000e+00> : vector<8x32xf32>
    %85 = tpu.matmul %80, %84, %cst_38 {dimension_numbers = #tpu.dot_dimension_numbers<[1], [0], [0], [1], [0, 0, 1, 1], [], []>} : vector<8x32xf32>, vector<32x32xf32>, vector<8x32xf32> -> vector<8x32xf32>
    %86 = vector.extract_strided_slice %83 {offsets = [0, 0], sizes = [1, 32], strides = [1, 1]} : vector<1x96xf32> to vector<1x32xf32>
    %87 = vector.broadcast %86 : vector<1x32xf32> to vector<8x32xf32>
    %88 = arith.addf %85, %87 : vector<8x32xf32>
    %89 = vector.extract_strided_slice %82 {offsets = [0, 32], sizes = [32, 64], strides = [1, 1]} : vector<32x96xf32> to vector<32x64xf32>
    %cst_39 = arith.constant dense<0.000000e+00> : vector<8x64xf32>
    %90 = tpu.matmul %3, %89, %cst_39 {dimension_numbers = #tpu.dot_dimension_numbers<[1], [0], [0], [1], [0, 0, 1, 1], [], []>} : vector<8x32xf32>, vector<32x64xf32>, vector<8x64xf32> -> vector<8x64xf32>
    %91 = vector.extract_strided_slice %83 {offsets = [0, 32], sizes = [1, 64], strides = [1, 1]} : vector<1x96xf32> to vector<1x64xf32>
    %92 = vector.broadcast %91 : vector<1x64xf32> to vector<8x64xf32>
    %93 = arith.addf %90, %92 : vector<8x64xf32>
    %94 = vector.extract_strided_slice %93 {offsets = [0, 0], sizes = [8, 32], strides = [1, 1]} : vector<8x64xf32> to vector<8x32xf32>
    %95 = vector.extract_strided_slice %93 {offsets = [0, 32], sizes = [8, 32], strides = [1, 1]} : vector<8x64xf32> to vector<8x32xf32>
    %96 = vector.shape_cast %88 : vector<8x32xf32> to vector<8x4x8xf32>
    %97 = vector.shape_cast %94 : vector<8x32xf32> to vector<8x4x8xf32>
    %98 = vector.shape_cast %95 : vector<8x32xf32> to vector<8x4x8xf32>
    "tpu.trace_start"() <{level = 10 : i32, message = "qhd,khd->hqk"}> : () -> ()
    %cst_40 = arith.constant dense<0.000000e+00> : vector<4x8x8xf32>
    %99 = tpu.matmul %96, %97, %cst_40 {dimension_numbers = #tpu.dot_dimension_numbers<[2], [2], [0], [0], [0, 1, 0, 0, 1, 0], [1], [1]>} : vector<8x4x8xf32>, vector<8x4x8xf32>, vector<4x8x8xf32> -> vector<4x8x8xf32>
    "tpu.trace_stop"() : () -> ()
    %cst_41 = arith.constant 0.353553385 : f32
    %100 = vector.broadcast %cst_41 : f32 to vector<4x8x8xf32>
    %101 = arith.mulf %99, %100 : vector<4x8x8xf32>
    %102 = vector.shape_cast %18 : vector<1x8xf32> to vector<1x1x8xf32>
    %103 = vector.broadcast %102 : vector<1x1x8xf32> to vector<4x8x8xf32>
    %104 = arith.addf %101, %103 : vector<4x8x8xf32>
    %cst_42 = arith.constant dense<0xFF800000> : vector<4x8xf32>
    %105 = vector.multi_reduction <maximumf>, %104, %cst_42 [2] : vector<4x8x8xf32> to vector<4x8xf32>
    %106 = vector.shape_cast %105 : vector<4x8xf32> to vector<4x8x1xf32>
    %107 = vector.broadcast %106 : vector<4x8x1xf32> to vector<4x8x8xf32>
    %108 = arith.subf %104, %107 : vector<4x8x8xf32>
    %109 = math.exp %108 : vector<4x8x8xf32>
    %cst_43 = arith.constant dense<0.000000e+00> : vector<4x8xf32>
    %110 = vector.multi_reduction <add>, %109, %cst_43 [2] : vector<4x8x8xf32> to vector<4x8xf32>
    %111 = vector.shape_cast %110 : vector<4x8xf32> to vector<4x8x1xf32>
    %112 = tpu.reciprocal %111 {approx = true} : vector<4x8x1xf32> -> vector<4x8x1xf32>
    %113 = vector.broadcast %112 : vector<4x8x1xf32> to vector<4x8x8xf32>
    %114 = arith.mulf %109, %113 : vector<4x8x8xf32>
    "tpu.trace_start"() <{level = 10 : i32, message = "hqk,khd->qhd"}> : () -> ()
    %cst_44 = arith.constant dense<0.000000e+00> : vector<4x8x8xf32>
    %115 = tpu.matmul %98, %114, %cst_44 {dimension_numbers = #tpu.dot_dimension_numbers<[0], [2], [2], [1], [0, 1, 0, 2, 1, 1], [1], [0]>} : vector<8x4x8xf32>, vector<4x8x8xf32>, vector<4x8x8xf32> -> vector<4x8x8xf32>
    %116 = tpu.transpose %115, [2, 0, 1] : vector<4x8x8xf32> -> vector<8x4x8xf32>
    "tpu.trace_stop"() : () -> ()
    %117 = vector.shape_cast %116 : vector<8x4x8xf32> to vector<8x32xf32>
    %c1_45 = arith.constant 1 : index
    %c0_46 = arith.constant 0 : index
    %c0_47 = arith.constant 0 : index
    %118 = vector.load %arg6[%c1_45, %c0_46, %c0_47] : memref<2x32x32xf32, #tpu.memory_space<vmem>>, vector<1x32x32xf32>
    %119 = vector.shape_cast %118 : vector<1x32x32xf32> to vector<32x32xf32>
    %cst_48 = arith.constant dense<0.000000e+00> : vector<8x32xf32>
    %120 = tpu.matmul %117, %119, %cst_48 {dimension_numbers = #tpu.dot_dimension_numbers<[1], [0], [0], [1], [0, 0, 1, 1], [], []>} : vector<8x32xf32>, vector<32x32xf32>, vector<8x32xf32> -> vector<8x32xf32>
    %121 = vector.extract_strided_slice %4 {offsets = [3, 0], sizes = [1, 32], strides = [1, 1]} : vector<12x96xf32> to vector<1x32xf32>
    %122 = vector.broadcast %121 : vector<1x32xf32> to vector<8x32xf32>
    %123 = arith.addf %120, %122 : vector<8x32xf32>
    %124 = arith.addf %80, %123 : vector<8x32xf32>
    %125 = vector.extract_strided_slice %4 {offsets = [8, 0], sizes = [1, 32], strides = [1, 1]} : vector<12x96xf32> to vector<1x32xf32>
    %126 = vector.extract_strided_slice %4 {offsets = [9, 0], sizes = [1, 32], strides = [1, 1]} : vector<12x96xf32> to vector<1x32xf32>
    %cst_49 = arith.constant dense<0.000000e+00> : vector<8xf32>
    %127 = vector.multi_reduction <add>, %124, %cst_49 [1] : vector<8x32xf32> to vector<8xf32>
    %128 = vector.shape_cast %127 : vector<8xf32> to vector<8x1xf32>
    %cst_50 = arith.constant 3.200000e+01 : f32
    %129 = vector.broadcast %cst_50 : f32 to vector<8x1xf32>
    %130 = arith.divf %128, %129 : vector<8x1xf32>
    %131 = vector.broadcast %130 : vector<8x1xf32> to vector<8x32xf32>
    %132 = arith.subf %124, %131 : vector<8x32xf32>
    %133 = arith.mulf %132, %132 : vector<8x32xf32>
    %cst_51 = arith.constant dense<0.000000e+00> : vector<8xf32>
    %134 = vector.multi_reduction <add>, %133, %cst_51 [1] : vector<8x32xf32> to vector<8xf32>
    %135 = vector.shape_cast %134 : vector<8xf32> to vector<8x1xf32>
    %cst_52 = arith.constant 3.200000e+01 : f32
    %136 = vector.broadcast %cst_52 : f32 to vector<8x1xf32>
    %137 = arith.divf %135, %136 : vector<8x1xf32>
    %138 = vector.broadcast %130 : vector<8x1xf32> to vector<8x32xf32>
    %139 = arith.subf %124, %138 : vector<8x32xf32>
    %cst_53 = arith.constant 9.99999974E-6 : f32
    %140 = vector.broadcast %cst_53 : f32 to vector<8x1xf32>
    %141 = arith.addf %137, %140 : vector<8x1xf32>
    %142 = math.rsqrt %141 : vector<8x1xf32>
    %143 = vector.broadcast %142 : vector<8x1xf32> to vector<8x32xf32>
    %144 = arith.mulf %139, %143 : vector<8x32xf32>
    %145 = vector.broadcast %125 : vector<1x32xf32> to vector<8x32xf32>
    %146 = arith.mulf %144, %145 : vector<8x32xf32>
    %147 = vector.broadcast %126 : vector<1x32xf32> to vector<8x32xf32>
    %148 = arith.addf %146, %147 : vector<8x32xf32>
    %c0_54 = arith.constant 0 : index
    %c0_55 = arith.constant 0 : index
    %149 = vector.load %arg7[%c0_54, %c0_55] : memref<32x64xf32, #tpu.memory_space<vmem>>, vector<32x64xf32>
    %cst_56 = arith.constant dense<0.000000e+00> : vector<8x64xf32>
    %150 = tpu.matmul %148, %149, %cst_56 {dimension_numbers = #tpu.dot_dimension_numbers<[1], [0], [0], [1], [0, 0, 1, 1], [], []>} : vector<8x32xf32>, vector<32x64xf32>, vector<8x64xf32> -> vector<8x64xf32>
    %151 = vector.extract_strided_slice %4 {offsets = [4, 0], sizes = [1, 64], strides = [1, 1]} : vector<12x96xf32> to vector<1x64xf32>
    %152 = vector.broadcast %151 : vector<1x64xf32> to vector<8x64xf32>
    %153 = arith.addf %150, %152 : vector<8x64xf32>
    %cst_57 = arith.constant 0.000000e+00 : f32
    %154 = vector.broadcast %cst_57 : f32 to vector<8x64xf32>
    %155 = arith.maximumf %153, %154 : vector<8x64xf32>
    %c0_58 = arith.constant 0 : index
    %c0_59 = arith.constant 0 : index
    %156 = vector.load %arg8[%c0_58, %c0_59] : memref<64x32xf32, #tpu.memory_space<vmem>>, vector<64x32xf32>
    %cst_60 = arith.constant dense<0.000000e+00> : vector<8x32xf32>
    %157 = tpu.matmul %155, %156, %cst_60 {dimension_numbers = #tpu.dot_dimension_numbers<[1], [0], [0], [1], [0, 0, 1, 1], [], []>} : vector<8x64xf32>, vector<64x32xf32>, vector<8x32xf32> -> vector<8x32xf32>
    %158 = vector.extract_strided_slice %4 {offsets = [5, 0], sizes = [1, 32], strides = [1, 1]} : vector<12x96xf32> to vector<1x32xf32>
    %159 = vector.broadcast %158 : vector<1x32xf32> to vector<8x32xf32>
    %160 = arith.addf %157, %159 : vector<8x32xf32>
    %161 = arith.addf %148, %160 : vector<8x32xf32>
    %162 = vector.extract_strided_slice %4 {offsets = [10, 0], sizes = [1, 32], strides = [1, 1]} : vector<12x96xf32> to vector<1x32xf32>
    %163 = vector.extract_strided_slice %4 {offsets = [11, 0], sizes = [1, 32], strides = [1, 1]} : vector<12x96xf32> to vector<1x32xf32>
    %cst_61 = arith.constant dense<0.000000e+00> : vector<8xf32>
    %164 = vector.multi_reduction <add>, %161, %cst_61 [1] : vector<8x32xf32> to vector<8xf32>
    %165 = vector.shape_cast %164 : vector<8xf32> to vector<8x1xf32>
    %cst_62 = arith.constant 3.200000e+01 : f32
    %166 = vector.broadcast %cst_62 : f32 to vector<8x1xf32>
    %167 = arith.divf %165, %166 : vector<8x1xf32>
    %168 = vector.broadcast %167 : vector<8x1xf32> to vector<8x32xf32>
    %169 = arith.subf %161, %168 : vector<8x32xf32>
    %170 = arith.mulf %169, %169 : vector<8x32xf32>
    %cst_63 = arith.constant dense<0.000000e+00> : vector<8xf32>
    %171 = vector.multi_reduction <add>, %170, %cst_63 [1] : vector<8x32xf32> to vector<8xf32>
    %172 = vector.shape_cast %171 : vector<8xf32> to vector<8x1xf32>
    %cst_64 = arith.constant 3.200000e+01 : f32
    %173 = vector.broadcast %cst_64 : f32 to vector<8x1xf32>
    %174 = arith.divf %172, %173 : vector<8x1xf32>
    %175 = vector.broadcast %167 : vector<8x1xf32> to vector<8x32xf32>
    %176 = arith.subf %161, %175 : vector<8x32xf32>
    %cst_65 = arith.constant 9.99999974E-6 : f32
    %177 = vector.broadcast %cst_65 : f32 to vector<8x1xf32>
    %178 = arith.addf %174, %177 : vector<8x1xf32>
    %179 = math.rsqrt %178 : vector<8x1xf32>
    %180 = vector.broadcast %179 : vector<8x1xf32> to vector<8x32xf32>
    %181 = arith.mulf %176, %180 : vector<8x32xf32>
    %182 = vector.broadcast %162 : vector<1x32xf32> to vector<8x32xf32>
    %183 = arith.mulf %181, %182 : vector<8x32xf32>
    %184 = vector.broadcast %163 : vector<1x32xf32> to vector<8x32xf32>
    %185 = arith.addf %183, %184 : vector<8x32xf32>
    %c0_66 = arith.constant 0 : index
    %c0_67 = arith.constant 0 : index
    %c0_68 = arith.constant 0 : index
    %186 = vector.load %arg10[%c0_66, %c0_67, %c0_68] : memref<1x8x32xf32, #tpu.memory_space<vmem>>, vector<1x8x32xf32>
    %187 = vector.shape_cast %186 : vector<1x8x32xf32> to vector<8x32xf32>
    %188 = vector.shape_cast %185 : vector<8x32xf32> to vector<1x8x32xf32>
    tpu.vector_store %arg10[%c0_66, %c0_67, %c0_68], %188 {strides = array<i32>} : memref<1x8x32xf32, #tpu.memory_space<vmem>>, vector<1x8x32xf32>,
    return
  }
  func.func @transform_0(%arg0: i32) -> (i32, i32, i32) {
    %c0_i32 = arith.constant 0 : i32
    %c0_i32_0 = arith.constant 0 : i32
    %c0_i32_1 = arith.constant 0 : i32
    return %arg0, %c0_i32, %c0_i32_0 : i32, i32, i32
  }
  func.func @transform_1(%arg0: i32) -> (i32, i32, i32) {
    %c0_i32 = arith.constant 0 : i32
    %c0_i32_0 = arith.constant 0 : i32
    %c0_i32_1 = arith.constant 0 : i32
    return %arg0, %c0_i32, %c0_i32_0 : i32, i32, i32
  }
  func.func @transform_2(%arg0: i32) -> (i32, i32, i32) {
    %c0_i32 = arith.constant 0 : i32
    %c0_i32_0 = arith.constant 0 : i32
    %c0_i32_1 = arith.constant 0 : i32
    return %arg0, %c0_i32, %c0_i32_0 : i32, i32, i32
  }
  func.func @transform_3(%arg0: i32) -> (i32, i32, i32) {
    %c0_i32 = arith.constant 0 : i32
    %c0_i32_0 = arith.constant 0 : i32
    %c0_i32_1 = arith.constant 0 : i32
    return %arg0, %c0_i32, %c0_i32_0 : i32, i32, i32
  }
  func.func @transform_4(%arg0: i32) -> (i32, i32, i32) {
    %c0_i32 = arith.constant 0 : i32
    %c0_i32_0 = arith.constant 0 : i32
    %c0_i32_1 = arith.constant 0 : i32
    %c0_i32_2 = arith.constant 0 : i32
    return %c0_i32, %c0_i32_0, %c0_i32_1 : i32, i32, i32
  }
  func.func @transform_5(%arg0: i32) -> (i32, i32, i32) {
    %c0_i32 = arith.constant 0 : i32
    %c0_i32_0 = arith.constant 0 : i32
    %c0_i32_1 = arith.constant 0 : i32
    %c0_i32_2 = arith.constant 0 : i32
    return %c0_i32, %c0_i32_0, %c0_i32_1 : i32, i32, i32
  }
  func.func @transform_6(%arg0: i32) -> (i32, i32) {
    %c0_i32 = arith.constant 0 : i32
    %c0_i32_0 = arith.constant 0 : i32
    %c0_i32_1 = arith.constant 0 : i32
    return %c0_i32, %c0_i32_0 : i32, i32
  }
  func.func @transform_7(%arg0: i32) -> (i32, i32) {
    %c0_i32 = arith.constant 0 : i32
    %c0_i32_0 = arith.constant 0 : i32
    %c0_i32_1 = arith.constant 0 : i32
    return %c0_i32, %c0_i32_0 : i32, i32
  }
  func.func @transform_8(%arg0: i32) -> (i32, i32) {
    %c0_i32 = arith.constant 0 : i32
    %c0_i32_0 = arith.constant 0 : i32
    %c0_i32_1 = arith.constant 0 : i32
    return %c0_i32, %c0_i32_0 : i32, i32
  }
  func.func @transform_9(%arg0: i32) -> (i32, i32, i32) {
    %c0_i32 = arith.constant 0 : i32
    %c0_i32_0 = arith.constant 0 : i32
    %c0_i32_1 = arith.constant 0 : i32
    return %arg0, %c0_i32, %c0_i32_0 : i32, i32, i32
  }
}

</mosaic_0001>

<bundles_post_ra>
// kernel: tpu_custom_call.1
= control target key start
LH: loop header
LB: loop body
LE: loop exit
PB: predicated region body
PF: predicated region fallthrough
CT: control target
= control target key end

     0   :  { %s5038_s0 = inlined_call_operand.hbm [shape: f32[2,8,32], index: 0, kind: input, shape index: {}]   ;;  %s5039_s1 = inlined_call_operand.hbm [shape: f32[2,8,32], index: 1, kind: input, shape index: {}]   ;;  %s5040_s2 = inlined_call_operand.hbm [shape: f32[2,8,8], index: 2, kind: input, shape index: {}]   ;;  %s5041_s3 = inlined_call_operand.vmem [shape: f32[2,1,8], index: 3, kind: input, shape index: {}]   ;;  %s5042_s4 = inlined_call_operand.vmem [shape: f32[2,32,96], index: 4, kind: input, shape index: {}]   ;;  %s5043_s5 = inlined_call_operand.hbm [shape: f32[2,32,32], index: 5, kind: input, shape index: {}]   ;;  %s5044_s6 = inlined_call_operand.vmem [shape: f32[32,64], index: 6, kind: input, shape index: {}]   ;;  %s5045_s7 = inlined_call_operand.vmem [shape: f32[64,32], index: 7, kind: input, shape index: {}]   ;;  %s5046_s8 = inlined_call_operand.hbm [shape: f32[12,96], index: 8, kind: input, shape index: {}]   ;;  %s5047_s9 = inlined_call_operand.hbm [shape: f32[2,8,32], index: 9, kind: output, shape index: {}]  }
   0x1   :  { %5066 = sst [smem:[#allocation22_spill]] %s5038_s0 }
   0x2   :  { %5067 = sst [smem:[#allocation23_spill]] %s5043_s5 }
   0x3   :  { %5068 = sst [smem:[#allocation24_spill]] %s5047_s9 }
   0x4   :  { %14 = vsyncpa [#allocation3], 0 }
   0x5   :  { %16 = vsyncpa [#allocation3 + $0x1], 0 }
   0x6   :  { %17 = vsyncpa [#allocation6], 0 }
   0x7   :  { %19 = vsyncpa [#allocation6 + $0x1], 0 }
   0x8   :  { %20 = vsyncpa [#allocation9], 0 }
   0x9   :  { %21 = vsyncpa [#allocation4], 0 }
   0xa   :  { %23 = vsyncpa [#allocation4 + $0x1], 0  ;;  %s4423_s30 = smov 0   ;;  %s4425_s10 = smov 0  }
   0xb   :  { %s4427_s11 = smov 0   ;;  %s4429_s12 = smov 0  }
   0xc LB: > { %5069 = sst [smem:[#allocation16_spill]] %s4339_s30  ;;  %s4444_s13 = sadd.s32 4294967295, %s4351_s12   ;;  %s4351_s12 = sphi %s4429_s12, %s5101_s12   ;;  %s4347_s11 = sphi %s4427_s11, %s5105_s11   ;;  %s4343_s10 = sphi %s4425_s10, %s5104_s10   ;;  %s4339_s30 = sphi %s4423_s30, %s5103_s30  }
   0xd   : > { %5070 = sst [smem:[#allocation17_spill]] %s4351_s12  ;;  %s3716_s14 = sadd.s32 4294967294, %s4351_s12  }
   0xe   : > { %p49_p0 = scmp.ne.s32.totalorder %s4343_s10, %s4339_s30  ;;  %p5055_p1 = scmp.eq.s32.totalorder %s4444_s13, 0 }
   0xf   : > { %p256_p2 = scmp.eq.s32.totalorder %s4444_s13, 1  ;;  %p262_p3 = scmp.eq.s32.totalorder %s3716_s14, 1 }
  0x10   : > { %p4453_p4 = por %p5055_p1, %p49_p0  ;;  %p3717_p5 = scmp.ge.s32.totalorder %s4351_s12, 1 }
  0x11   : > { %p4458_p6 = por %p262_p3, %p49_p0  ;;  %p269_p7 = scmp.lt.s32.totalorder %s4351_s12, 3 }
  0x12   : > { %s5071_s15 = scalar_select %p4453_p4, 1, 0 }
  0x13   : > { %s5072_s16 = scalar_select %p4458_p6, 1, 0 }
  0x14   : > { %p4463_p8 = pnand %p3717_p5, %p269_p7  ;;  %s4353_s18 = smov [#allocation8]  }
  0x15   : > { %5073 = sst [smem:[#allocation18_spill]] %s5072_s16  ;;  %s284_s19 = sshll.u32 %s4353_s18, 4  ;;  %s285_s19 = int_to_ptr.vmem [resolvable:$true] %s284_s19 }
  0x16   : > { %s5074_s17 = scalar_select %p4463_p8, 1, 0 }
  0x17   : > { %p4029_p9 = pneg %p4463_p8  ;;  %s4477_s21 = sadd.s32 1, %s4351_s12  }
  0x18   : > { %5076 = sst [smem:[#allocation19_spill]] %s4477_s21  ;;  %s36_s22 = sadd.s32 1, %s4347_s11 }
  0x19   : > { %p4472_p11 = pnand %p4029_p9, %p5055_p1  ;;  %s33_s23 = ssub.s32 %s4351_s12, %s4477_s21 }
  0x1a   : > { %s4154_s24 = scalar_lea.vmem %s285_s19, 1024  ;;  %p4162_p5 = scmp.lt.s32.totalorder %s285_s19, %s285_s19 }
  0x1b   : > { %s5075_s20 = scalar_select %p4472_p11, 1, 0 }
  0x1c   : > { %p5056_p12 = pneg %p4472_p11  ;;  %p4155_p13 = scmp.ne.s32.totalorder %s285_s19, %s4154_s24 }
  0x1d   : > { %p4163_p7 = scmp.lt.s32.totalorder %s4154_s24, %s4154_s24 }
  0x1e   : > { %p4157_p0 = pnand %p4155_p13, %p5056_p12 }
  0x1f   : > { %p4164_p9 = por %p4163_p7, %p4162_p5 }
  0x20   : > { %p4158_p3 = pneg %p4157_p0 }
  0x22   : > { %p4165_p10 = pnand %p4164_p9, %p4158_p3 }
  0x24   : > { %4168 = shalt.err (!%p4165_p10)
}
  0x25   : > { %s5050_s25 = smov 128   ;;  %s5051_s26 = smov 8  }
  0x26   : > { %s5077_s5 = sld [smem:[#allocation23_spill]]  ;;  %p34_p10 = scmp.eq.s32.totalorder %s33_s23, 0 }
  0x27   : > { %p43_p13 = scmp.ne.s32.totalorder %s4347_s11, %s4343_s10  ;;  %p44_p0 = scmp.eq.s32.totalorder %s4351_s12, 0 }
  0x28   : > { %p4052_p3 = scmp.lt.s32.totalorder %s4351_s12, 2  ;;  %s5052_s18 = sand.u32 1, %s4347_s11  }
  0x29   : > { %s4500_s29 = scalar_select %p34_p10, %s4347_s11, %s36_s22  }
  0x2a   : > { %p45_p5 = por %p44_p0, %p43_p13  ;;  %p4504_p7 = por %p256_p2, %p43_p13 }
  0x2b   : > { %5078 = sst [smem:[#allocation20_spill]] %s4500_s29  ;;  %s4510_s24 = sshll.u32 %s4351_s12, 7 }
  0x2c   : > { %4032 = dma.hbm_to_vmem [thread:$0]  (!%p4472_p11), %s5077_s5, 1024, %s285_s19, [#allocation9], %s5050_s25, %s5050_s25, %s5051_s26  }
  0x2d   : > { %s5079_s14 = scalar_select %p4504_p7, 1, 0 }
  0x2e   : > { %s4514_s21 = sshll.u32 %s5052_s18, 3  ;;  %p4516_p9 = pnand %p4052_p3, %p45_p5 }
  0x2f   : > { %5080 = sst [smem:[#allocation21_spill]] %s5079_s14  ;;  %s335_s22 = sand.u32 1, %s4351_s12  }
  0x30   : > { %s4525_s28 = scalar_lea.hbm %s5039_s1, %s4510_s24  ;;  %s339_s25 = scalar_lea.vmem [#allocation5], %s4514_s21 }
  0x31   : > { %s346_s26 = sshll.u32 %s339_s25, 4  ;;  %s4528_s18 = scalar_lea.sflag [#allocation6], %s335_s22  ;;  %s347_s26 = int_to_ptr.vmem [resolvable:$true] %s346_s26 }
  0x32   : > { %s4169_s5 = scalar_lea.hbm %s4525_s28, 128  ;;  %p4534_p10 = pneg %p4516_p9 }
  0x33   : > { %p4170_p2 = scmp.ne.s32.totalorder %s4525_s28, %s4169_s5  ;;  %s4174_s12 = scalar_lea.hbm %s5039_s1, 256 }
  0x34   : > { %p4175_p3 = scmp.lt.s32.totalorder %s4525_s28, %s5039_s1  ;;  %p4176_p5 = scmp.lt.s32.totalorder %s4174_s12, %s4169_s5 }
  0x35   : > { %p4172_p13 = pnand %p4534_p10, %p4170_p2 }
  0x36   : > { %p4177_p1 = por %p4176_p5, %p4175_p3 }
  0x37   : > { %p4173_p0 = pneg %p4172_p13 }
  0x39   : > { %p4178_p12 = pnand %p4177_p1, %p4173_p0 }
  0x3b   : > { %4181 = shalt.err (!%p4178_p12)
}
  0x3c   : > { %s4182_s22 = scalar_lea.vmem %s347_s26, 128  ;;  %s4356_s30 = smov [#allocation5]  }
  0x3d   : > { %p4183_p6 = scmp.ne.s32.totalorder %s347_s26, %s4182_s22  ;;  %s4187_s9 = sshll.u32 %s4356_s30, 4  ;;  %s4188_s9 = int_to_ptr.vmem [resolvable:$false] %s4187_s9 }
  0x3e   : > { %s4189_s14 = scalar_lea.vmem %s4188_s9, 256  ;;  %p4190_p2 = scmp.lt.s32.totalorder %s347_s26, %s4188_s9 }
  0x3f   : > { %p4185_p7 = pnand %p4183_p6, %p4534_p10  ;;  %p4191_p13 = scmp.lt.s32.totalorder %s4189_s14, %s4182_s22 }
  0x41   : > { %p4186_p4 = pneg %p4185_p7  ;;  %p4192_p8 = por %p4191_p13, %p4190_p2 }
  0x43   : > { %p4193_p11 = pnand %p4192_p8, %p4186_p4 }
  0x45   : > { %4196 = shalt.err (!%p4193_p11)
}
  0x46   : > { %4042 = dma.hbm_to_vmem [thread:$0]  (!%p4516_p9), %s4525_s28, 128, %s347_s26, %s4528_s18  }
  0x47   : > { %s4357_s5 = smov [#allocation10]   ;;  %p5083_p6 = scmp.ne.s32.totalorder %s5075_s20, 0 }
  0x48   : > { %s303_s12 = sshll.u32 %s4357_s5, 4  ;;  %s304_s12 = int_to_ptr.vmem [resolvable:$true] %s303_s12 }
  0x49   : > { %s4208_s16 = scalar_lea.vmem %s304_s12, 256  ;;  %p5084_p12 = pneg %p5083_p6 }
  0x4a   : > { %p4209_p1 = scmp.ne.s32.totalorder %s304_s12, %s4208_s16  ;;  %p4216_p3 = scmp.lt.s32.totalorder %s304_s12, %s304_s12 }
  0x4b   : > { %p4217_p5 = scmp.lt.s32.totalorder %s4208_s16, %s4208_s16 }
  0x4c   : > { %p4211_p7 = pnand %p4209_p1, %p5084_p12 }
  0x4d   : > { %p4218_p2 = por %p4217_p5, %p4216_p3 }
  0x4e   : > { %p4212_p0 = pneg %p4211_p7 }
  0x50   : > { %p4219_p4 = pnand %p4218_p2, %p4212_p0 }
  0x52   : > { %4222 = shalt.err (!%p4219_p4)
}
  0x53   : > { %s5085_s9 = smov 8   ;;  %s5086_s30 = smov 128  }
  0x54   : > { %4035 = dma.hbm_to_vmem [thread:$0]  (!%p5083_p6), %s5046_s8, 256, %s304_s12, [#allocation9], %s5086_s30, %s5086_s30, %s5085_s9  }
  0x55   : > { %s5087_s0 = sld [smem:[#allocation22_spill]]  ;;  %s321_s20 = scalar_lea.vmem [#allocation2], %s4514_s21 }
  0x56   : > { %s328_s25 = sshll.u32 %s321_s20, 4  ;;  %s5088_s22 = sand.u32 1, %s4347_s11   ;;  %s329_s25 = int_to_ptr.vmem [resolvable:$true] %s328_s25 }
  0x57   : > { %s318_s5 = scalar_lea.sflag [#allocation3], %s5088_s22 }
  0x5b   : > { %s4568_s27 = scalar_lea.hbm %s5087_s0, %s4510_s24  ;;  %s4228_s9 = scalar_lea.hbm %s5087_s0, 256 }
  0x5c   : > { %s4223_s16 = scalar_lea.hbm %s4568_s27, 128  ;;  %p4229_p1 = scmp.lt.s32.totalorder %s4568_s27, %s5087_s0 }
  0x5d   : > { %p4224_p8 = scmp.ne.s32.totalorder %s4568_s27, %s4223_s16  ;;  %p4230_p6 = scmp.lt.s32.totalorder %s4228_s9, %s4223_s16 }
  0x5f   : > { %p4226_p11 = pnand %p4224_p8, %p4534_p10  ;;  %p4231_p12 = por %p4230_p6, %p4229_p1 }
  0x61   : > { %p4227_p13 = pneg %p4226_p11 }
  0x63   : > { %p4232_p7 = pnand %p4231_p12, %p4227_p13 }
  0x65   : > { %4235 = shalt.err (!%p4232_p7)
}
  0x66   : > { %s4236_s28 = scalar_lea.vmem %s329_s25, 128  ;;  %s4358_s23 = smov [#allocation2]  }
  0x67   : > { %p4237_p0 = scmp.ne.s32.totalorder %s329_s25, %s4236_s28  ;;  %s4241_s20 = sshll.u32 %s4358_s23, 4  ;;  %s4242_s20 = int_to_ptr.vmem [resolvable:$false] %s4241_s20 }
  0x68   : > { %s4243_s22 = scalar_lea.vmem %s4242_s20, 256  ;;  %p4244_p2 = scmp.lt.s32.totalorder %s329_s25, %s4242_s20 }
  0x69   : > { %p4239_p3 = pnand %p4237_p0, %p4534_p10  ;;  %p4245_p4 = scmp.lt.s32.totalorder %s4243_s22, %s4236_s28 }
  0x6b   : > { %p4240_p5 = pneg %p4239_p3  ;;  %p4246_p8 = por %p4245_p4, %p4244_p2 }
  0x6d   : > { %p4247_p11 = pnand %p4246_p8, %p4240_p5 }
  0x6f   : > { %4250 = shalt.err (!%p4247_p11)
}
  0x70   : > { %4039 = dma.hbm_to_vmem [thread:$0]  (!%p4516_p9), %s4568_s27, 128, %s329_s25, %s318_s5  }
  0x71   : > { %s362_s12 = scalar_lea.hbm %s5040_s2, %s4510_s24  ;;  %s357_s9 = scalar_lea.vmem [#allocation7], %s4514_s21 }
  0x72   : > { %s364_s30 = sshll.u32 %s357_s9, 4  ;;  %s4251_s14 = scalar_lea.hbm %s362_s12, 128  ;;  %s365_s30 = int_to_ptr.vmem [resolvable:$true] %s364_s30 }
  0x73   : > { %p4252_p13 = scmp.ne.s32.totalorder %s362_s12, %s4251_s14  ;;  %s4256_s20 = scalar_lea.hbm %s5040_s2, 256 }
  0x74   : > { %p4257_p12 = scmp.lt.s32.totalorder %s362_s12, %s5040_s2  ;;  %p4258_p7 = scmp.lt.s32.totalorder %s4256_s20, %s4251_s14 }
  0x75   : > { %p4254_p1 = pnand %p4252_p13, %p4534_p10 }
  0x76   : > { %p4259_p0 = por %p4258_p7, %p4257_p12 }
  0x77   : > { %p4255_p6 = pneg %p4254_p1 }
  0x79   : > { %p4260_p3 = pnand %p4259_p0, %p4255_p6 }
  0x7b   : > { %4263 = shalt.err (!%p4260_p3)
}
  0x7c   : > { %s4264_s21 = scalar_lea.vmem %s365_s30, 128  ;;  %s4359_s24 = smov [#allocation7]  }
  0x7d   : > { %p4265_p5 = scmp.ne.s32.totalorder %s365_s30, %s4264_s21  ;;  %s4269_s27 = sshll.u32 %s4359_s24, 4  ;;  %s4270_s27 = int_to_ptr.vmem [resolvable:$false] %s4269_s27 }
  0x7e   : > { %s4271_s25 = scalar_lea.vmem %s4270_s27, 256  ;;  %p4272_p8 = scmp.lt.s32.totalorder %s365_s30, %s4270_s27 }
  0x7f   : > { %p4267_p2 = pnand %p4265_p5, %p4534_p10  ;;  %p4273_p11 = scmp.lt.s32.totalorder %s4271_s25, %s4264_s21 }
  0x81   : > { %p4268_p4 = pneg %p4267_p2  ;;  %p4274_p13 = por %p4273_p11, %p4272_p8 }
  0x83   : > { %p4275_p1 = pnand %p4274_p13, %p4268_p4 }
  0x85   : > { %4278 = shalt.err (!%p4275_p1)
}
  0x86   : > { %4045 = dma.hbm_to_vmem [thread:$0]  (!%p4516_p9), %s362_s12, 128, %s365_s30, %s4528_s18  }
  0x87   : > { %p5089_p6 = scmp.ne.s32.totalorder %s5074_s17, 0 }
  0x88   : > { %s4610_s0 = sand.u32 (!%p5089_p6), 1, %s4343_s10   ;;  %p5090_p10 = scmp.ne.s32.totalorder (!%p5089_p6), %s5071_s15, 0 }
  0x89   : > { %379 = sbr.rel (%p5089_p6) target bundleno = 4796 (0x12bc), region = 56  ;;  %s4613_s29 = sshll.u32 (!%p5089_p6), %s4610_s0, 3 }
  0x8a   : > { %s382_s5 = scalar_lea.sflag (!%p5089_p6), [#allocation3], %s4610_s0  ;;  %s385_s16 = scalar_lea.vmem (!%p5089_p6), [#allocation2], %s4613_s29 }
  0x8e   : > { %4322 = dma.done.wait (%p5090_p10), %s382_s5, 128  }
  0x8f   : > { %4324 = vsyncadd (%p5090_p10), %s382_s5, 4294967168  ;;  %s390_s17 = sand.u32 1, %s4444_s13   ;;  %s394_s19 = scalar_lea.vmem [#allocation5], %s4613_s29 }
  0x90   : > { %s391_s18 = scalar_lea.sflag [#allocation6], %s390_s17 }
  0x91   : > { %4326 = dma.done.wait (%p5090_p10), %s391_s18, 256  }
  0x92   : > { %4328 = vsyncadd (%p5090_p10), %s391_s18, 4294967040  ;;  %s403_s26 = scalar_lea.vmem [#allocation7], %s4613_s29  ;;  %p5091_p9 = scmp.eq.s32.totalorder %s4444_s13, 0 }
  0x94   : > { %4330 = dma.done.wait (%p5091_p9), [#allocation9], 1280   ;;  %p5092_p12 = pmov %p5091_p9 }
  0x95   : > { %v4360_v0 = vmov 0.0   ;;  %vm4361_vm0 = vmmov 0   ;;  %v475_v1 = vld [vmem:[%s5042_s4 + $0x18] sm:$0xff]  ;;  %v474_v2 = vld [vmem:[%s5042_s4 + $0x10] sm:$0xff]  ;;  %v473_v3 = vld [vmem:[%s5042_s4 + $0x8] sm:$0xff]  ;;  %vm480_vm1 = vcmask 261120   ;;  %v476_v6 = vlaneseq }
  0x96   : > { %4332 = vsyncadd (%p5092_p12), [#allocation9], 4294966016  ;;  %3848 = vmatprep.subr.mxu0 %v4360_v0  ;;  %3856 = vmatprep.mubr.msk.f32.mxu0 %vm4361_vm0, %v4360_v0  ;;  %v472_v4 = vld [vmem:[%s5042_s4] sm:$0xff]  ;;  %v4665_v9 = vld [vmem:[#allocation10] sm:$0xff]  ;;  %s4362_s22 = smov 104   ;;  %s4363_s21 = smov 120  }
  0x97   : > { %3859 = vmatprep.subr.mxu1 %v4360_v0  ;;  %3861 = vmatprep.mubr.msk.f32.mxu1 %vm4361_vm0, %v4360_v0  ;;  %v4652_v5 = vld [vmem:[%s385_s16] sm:$0xff]  ;;  %v4660_v7 = vshrl.u32 %v476_v6, 7  ;;  %s4364_s24 = smov 96   ;;  %s4365_s27 = smov 112   ;;  %vm701_vm2 = vcmask 64512   ;;  %vm1763_vm4 = vcmask 130048  }
  0x98   : > { %3849 = vmatpush3.msra.mxu0 %v475_v1  ;;  %v466_v25 = vld [vmem:[%s403_s26] sm:$0xff]  ;;  %s4366_s25 = smov 64   ;;  %s4369_s5 = smov 16   ;;  %vm1765_vm5 = vcmask 195584   ;;  %vm3462_vm7 = vcmask 523264  }
  0x99   : > { %3850 = vmatprep.subr.mxu0 %v4360_v0  ;;  %v4663_v8 = vsub.s32 0, %v4660_v7  ;;  %vm467_vm3 = vcmp.eq.f32.partialorder %v466_v25, 0.0  ;;  %s4370_s16 = smov 8   ;;  %s4371_s17 = smov 24  }
  0x9a   : > { %3851 = vmatpush3.msra.mxu0 %v474_v2  ;;  %v468_v27 = vsel %vm467_vm3, -1e+09, %v4360_v0  ;;  %p459_p7 = scmp.lt.s32.totalorder %s4444_s13, 1  ;;  %s458_s18 = scalar_lea.vmem [#allocation11], %s4613_s29 }
  0x9b   : > { %3852 = vmatprep.subr.mxu0 %v4360_v0  ;;  %v479_v10 = vrot.slane %v4665_v9, %v4663_v8  ;;  %s3575_s26 = sshll.u32 %s458_s18, 4  ;;  %s5094_s9 = sld [smem:[#allocation24_spill]]  ;;  %s3576_s26 = int_to_ptr.vmem [resolvable:$true] %s3575_s26 }
  0x9c   : > { %3853 = vmatpush3.msra.mxu0 %v473_v3  ;;  %s3562_s14 = scalar_lea.sflag [#allocation4], %s4610_s0  ;;  %s4279_s28 = scalar_lea.vmem %s3576_s26, 128 }
  0x9d   : > { %3854 = vmatprep.subr.mxu0 %v4360_v0  ;;  %p4280_p0 = scmp.ne.s32.totalorder %s3576_s26, %s4279_s28 }
  0x9e   : > { %3855 = vmatpush3.msra.mxu0 %v472_v4 }
  0x9f   : > { %3857 = vmatmul.mubr.msk.f32.vlgmr.msra.gmra.mxu0 %vm480_vm1, %v4652_v5  ;;  %3874 = vmatprep.subr.mxu0 %v4360_v0 }
  0xa0   : > { %3876 = vmatprep.mubr.msk.f32.mxu0 %vm4361_vm0, %v4360_v0 }
 0x15f   : > { %v550_v11 = vpop.f32.mrf.mxu0 }
 0x160   : > { %v4669_v12 = vadd.f32 %v550_v11, %v479_v10 }
 0x161   : > { %v3858_v13 = vpop.f32.mrf.mxu0 }
 0x162   : > { %559 = vrot.lane.b32.xlu1 %v4669_v12, %s4362_s22  ;;  %555 = vrot.lane.b32.xlu0 %v4669_v12, %s4363_s21 }
 0x166   : > { %561 = vrot.lane.b32.xlu1 %v4669_v12, %s4364_s24  ;;  %557 = vrot.lane.b32.xlu0 %v4669_v12, %s4365_s27 }
 0x1d4   : > { %v4679_v14 = vpop.permute.xlu0 %555  ;;  %v4683_v15 = vpop.permute.xlu1 %559 }
 0x1d5   : > { %563 = vrot.lane.b32.xlu0 %v4679_v14, %s4364_s24 }
 0x1d8   : > { %v558_v16 = vpop.permute.xlu0 %557  ;;  %v562_v17 = vpop.permute.xlu1 %561 }
 0x1d9   : > { %567 = vrot.lane.b32.xlu0 %v4683_v15, %s4364_s24  ;;  %565 = vrot.lane.b32.xlu1 %v558_v16, %s4364_s24 }
 0x202   : > { %573 = vxpose.xlu1.b32.start.end [1/1] (short) (narrow) %v562_v17, 8 }
 0x247   : > { %v564_v18 = vpop.permute.xlu0 %563 }
 0x248   : > { %605 = vxpose.xlu0.b32.start.end [1/1] (short) (narrow) %v564_v18, 8 }
 0x24b   : > { %v566_v19 = vpop.permute.xlu1 %565  ;;  %v568_v20 = vpop.permute.xlu0 %567 }
 0x24c   : > { %637 = vxpose.xlu0.b32.start.end [1/1] (short) (narrow) %v566_v19, 8 }
 0x250   : > { %669 = vxpose.xlu0.b32.start.end [1/1] (short) (narrow) %v568_v20, 8 }
 0x27e   : > { %v589_v21 = vpop.trf.xlu1 }
 0x27f   : > { %3860 = vmatpush3.msra.mxu1 %v589_v21 }
 0x280   : > { %3862 = vmatmul.mubr.msk.f32.vlgmr.msra.gmra.mxu1 %vm701_vm2, %v4669_v12  ;;  %3864 = vmatprep.subr.mxu1 %v4360_v0 }
 0x281   : > { %3866 = vmatprep.mubr.msk.f32.mxu1 %vm4361_vm0, %v4360_v0 }
 0x2c4   : > { %v621_v22 = vpop.trf.xlu0 }
 0x2c5   : > { %3865 = vmatpush3.msra.mxu1 %v621_v22 }
 0x2c6   : > { %3867 = vmatmul.mubr.msk.f32.vlgmr.msra.gmra.mxu1 %vm701_vm2, %v4679_v14  ;;  %3869 = vmatprep.subr.mxu1 %v4360_v0 }
 0x2c7   : > { %3871 = vmatprep.mubr.msk.f32.mxu1 %vm4361_vm0, %v4360_v0 }
 0x2c8   : > { %v653_v23 = vpop.trf.xlu0 }
 0x2c9   : > { %3870 = vmatpush3.msra.mxu1 %v653_v23 }
 0x2ca   : > { %3872 = vmatmul.mubr.msk.f32.vlgmr.msra.gmra.mxu1 %vm701_vm2, %v558_v16  ;;  %3879 = vmatprep.subr.mxu1 %v4360_v0 }
 0x2cb   : > { %3881 = vmatprep.mubr.msk.f32.mxu1 %vm4361_vm0, %v4360_v0 }
 0x2cc   : > { %v685_v24 = vpop.trf.xlu0 }
 0x2cd   : > { %3875 = vmatpush3.msra.mxu0 %v685_v24 }
 0x2ce   : > { %3877 = vmatmul.mubr.msk.f32.vlgmr.msra.gmra.mxu0 %vm701_vm2, %v4683_v15  ;;  %3884 = vmatprep.subr.mxu0 %v4360_v0 }
 0x2cf   : > { %3886 = vmatprep.mubr.msk.f32.mxu0 %vm4361_vm0, %v4360_v0 }
 0x340   : > { %v770_v26 = vpop.f32.mrf.mxu1 }
 0x341   : > { %v990_v28 = vmul.f32 0.35355338, %v770_v26 }
 0x342   : > { %v3863_v29 = vpop.f32.mrf.mxu1 }
 0x343   : > { %v994_v30 = vadd.f32 %v990_v28, %v468_v27 }
 0x345   : > { %v998_v31 = vsel %vm701_vm2, %v994_v30, -inf }
 0x346   : > { %999 = vmax.xlane.f32.xlu1 %v998_v31 }
 0x386   : > { %v842_v32 = vpop.f32.mrf.mxu1 }
 0x387   : > { %v991_v33 = vmul.f32 0.35355338, %v842_v32 }
 0x388   : > { %v3868_v34 = vpop.f32.mrf.mxu1 }
 0x389   : > { %v995_v35 = vadd.f32 %v991_v33, %v468_v27 }
 0x38a   : > { %v914_v36 = vpop.f32.mrf.mxu1 }
 0x38b   : > { %v992_v37 = vmul.f32 0.35355338, %v914_v36  ;;  %v1001_v38 = vsel %vm701_vm2, %v995_v35, -inf  ;;  %v1770_v36 = vld [vmem:[#allocation8 + $0x18] sm:$0xff] }
 0x38c   : > { %1002 = vmax.xlane.f32.xlu0 %v1001_v38  ;;  %v3873_v39 = vpop.f32.mrf.mxu1 }
 0x38d   : > { %v996_v40 = vadd.f32 %v992_v37, %v468_v27  ;;  %v4367_v37 = vmov 1983009808  }
 0x38e   : > { %v986_v41 = vpop.f32.mrf.mxu0  ;;  %v1617_v38 = vunpack.c.l.s4 %v4367_v37  ;;  %v3751_v37 = vld [vmem:[%s5042_s4 + $0x28] sm:$0xff] }
 0x38f   : > { %v993_v42 = vmul.f32 0.35355338, %v986_v41  ;;  %v1004_v43 = vsel %vm701_vm2, %v996_v40, -inf }
 0x390   : > { %1005 = vmax.xlane.f32.xlu1 %v1004_v43  ;;  %v3878_v44 = vpop.f32.mrf.mxu0  ;;  %v1618_v43 = vunpack.c.0.s8 %v1617_v38  ;;  %v3750_v38 = vld [vmem:[%s5042_s4 + $0x20] sm:$0xff] }
 0x391   : > { %v997_v45 = vadd.f32 %v993_v42, %v468_v27 }
 0x393   : > { %v1007_v46 = vsel %vm701_vm2, %v997_v45, -inf }
 0x394   : > { %1008 = vmax.xlane.f32.xlu1 %v1007_v46  ;;  %v4743_v46 = vsub.s32 %v1618_v43, %v4660_v7 }
 0x3a2   : > { %1042 = vrot.lane.b32.xlu0 %v4669_v12, %s4366_s25 }
 0x3a5   : > { %1044 = vrot.lane.b32.xlu1 %v4679_v14, %s4366_s25 }
 0x3a6   : > { %1046 = vrot.lane.b32.xlu0 %v558_v16, %s4366_s25 }
 0x3a9   : > { %1048 = vrot.lane.b32.xlu1 %v4683_v15, %s4366_s25 }
 0x3cf   : > { %v1000_v47 = vpop.xlane.xlu1 %999 }
 0x3d0   : > { %v1010_v48 = vsub.f32 %v994_v30, %v1000_v47 }
 0x3d2   : > { %v1014_v49 = vmul.f32 1.442695, %v1010_v48 }
 0x3d4   : > { %4104 = vpow2.f32 %v1014_v49 }
 0x3e1   : > { %v4105_v50 = vpop.eup %4104 }
 0x3e2   : > { %v1022_v51 = vsel %vm701_vm2, %v4105_v50, 0.0 }
 0x3e3   : > { %1023 = vadd.xlane.f32.xlu1 %v1022_v51 }
 0x415   : > { %v1003_v52 = vpop.xlane.xlu0 %1002 }
 0x416   : > { %v1011_v53 = vsub.f32 %v995_v35, %v1003_v52 }
 0x418   : > { %v1016_v54 = vmul.f32 1.442695, %v1011_v53 }
 0x419   : > { %v1006_v55 = vpop.xlane.xlu1 %1005  ;;  %v1043_v4 = vpop.permute.xlu0 %1042 }
 0x41a   : > { %4106 = vpow2.f32 %v1016_v54  ;;  %v1012_v56 = vsub.f32 %v996_v40, %v1006_v55  ;;  %v4368_v40 = vmov 1934713408  }
 0x41b   : > { %v1649_v41 = vunpack.c.l.s4 %v4368_v40 }
 0x41c   : > { %v1018_v57 = vmul.f32 1.442695, %v1012_v56 }
 0x41d   : > { %v1009_v58 = vpop.xlane.xlu1 %1008  ;;  %v1047_v10 = vpop.permute.xlu0 %1046 }
 0x41e   : > { %4108 = vpow2.f32 %v1018_v57  ;;  %v1013_v59 = vsub.f32 %v997_v45, %v1009_v58  ;;  %v1650_v45 = vunpack.c.0.s8 %v1649_v41 }
 0x420   : > { %v1020_v60 = vmul.f32 1.442695, %v1013_v59  ;;  %v4746_v52 = vsub.s32 %v1650_v45, %v4660_v7 }
 0x421   : > { %v1045_v6 = vpop.permute.xlu1 %1044 }
 0x422   : > { %4110 = vpow2.f32 %v1020_v60 }
 0x425   : > { %v1049_v11 = vpop.permute.xlu1 %1048 }
 0x427   : > { %v4107_v61 = vpop.eup %4106 }
 0x428   : > { %v1025_v62 = vsel %vm701_vm2, %v4107_v61, 0.0 }
 0x429   : > { %1026 = vadd.xlane.f32.xlu0 %v1025_v62  ;;  %v1768_v62 = vld [vmem:[#allocation8 + $0x8] sm:$0xff] }
 0x42b   : > { %v4109_v63 = vpop.eup %4108 }
 0x42c   : > { %v1028_v1 = vsel %vm701_vm2, %v4109_v63, 0.0 }
 0x42d   : > { %1029 = vadd.xlane.f32.xlu1 %v1028_v1 }
 0x42f   : > { %v4111_v2 = vpop.eup %4110 }
 0x430   : > { %v1031_v3 = vsel %vm701_vm2, %v4111_v2, 0.0 }
 0x431   : > { %1032 = vadd.xlane.f32.xlu0 %v1031_v3 }
 0x45e   : > { %1054 = vxpose.xlu0.b32.start.end [1/1] (short) (narrow) %v1043_v4, 8 }
 0x460   : > { %1086 = vxpose.xlu1.b32.start.end [1/1] (short) (narrow) %v1045_v6, 8 }
 0x462   : > { %1118 = vxpose.xlu0.b32.start.end [1/1] (short) (narrow) %v1047_v10, 8 }
 0x466   : > { %1150 = vxpose.xlu0.b32.start.end [1/1] (short) (narrow) %v1049_v11, 8 }
 0x46c   : > { %v1024_v12 = vpop.xlane.xlu1 %1023 }
 0x46d   : > { %4112 = vrcp.f32 %v1024_v12  ;;  %v1767_v12 = vld [vmem:[#allocation8] sm:$0xff] }
 0x47a   : > { %v4113_v13 = vpop.eup %4112 }
 0x47b   : > { %v1038_v14 = vmul.f32 %v4113_v13, %v4105_v50 }
 0x47d   : > { %3880 = vmatpush3.xpose.msk.msra.mxu1 %vm701_vm2, %v1038_v14 }
 0x47e   : > { %3889 = vmatprep.subr.mxu1 %v4360_v0 }
 0x4b2   : > { %v1027_v15 = vpop.xlane.xlu0 %1026 }
 0x4b3   : > { %4114 = vrcp.f32 %v1027_v15 }
 0x4b6   : > { %v1030_v18 = vpop.xlane.xlu1 %1029 }
 0x4b7   : > { %4116 = vrcp.f32 %v1030_v18 }
 0x4ba   : > { %v1033_v19 = vpop.xlane.xlu0 %1032 }
 0x4bb   : > { %4118 = vrcp.f32 %v1033_v19 }
 0x4c0   : > { %v4115_v16 = vpop.eup %4114 }
 0x4c1   : > { %v1039_v17 = vmul.f32 %v4115_v16, %v4107_v61  ;;  %v1769_v61 = vld [vmem:[#allocation8 + $0x10] sm:$0xff] }
 0x4c3   : > { %3885 = vmatpush3.xpose.msk.msra.mxu0 %vm701_vm2, %v1039_v17 }
 0x4c4   : > { %3894 = vmatprep.subr.mxu0 %v4360_v0  ;;  %v4117_v20 = vpop.eup %4116 }
 0x4c5   : > { %v1040_v23 = vmul.f32 %v4117_v20, %v4109_v63 }
 0x4c8   : > { %v4119_v21 = vpop.eup %4118 }
 0x4c9   : > { %v1041_v25 = vmul.f32 %v4119_v21, %v4111_v2 }
 0x4da   : > { %v1070_v22 = vpop.trf.xlu0 }
 0x4db   : > { %3882 = vmatmul.mubr.msk.f32.vlgmr.msra.gmra.mxu1 %vm701_vm2, %v1070_v22 }
 0x4dc   : > { %3890 = vmatpush3.xpose.msk.msra.mxu1 %vm701_vm2, %v1040_v23  ;;  %v1102_v24 = vpop.trf.xlu1  ;;  %3891 = vmatprep.mubr.msk.f32.mxu1 %vm4361_vm0, %v4360_v0 }
 0x4dd   : > { %3887 = vmatmul.mubr.msk.f32.vlgmr.msra.gmra.mxu0 %vm701_vm2, %v1102_v24  ;;  %3921 = vmatprep.subr.mxu1 %v4360_v0 }
 0x4de   : > { %3895 = vmatpush3.xpose.msk.msra.mxu0 %vm701_vm2, %v1041_v25  ;;  %v1134_v26 = vpop.trf.xlu0  ;;  %3896 = vmatprep.mubr.msk.f32.mxu0 %vm4361_vm0, %v4360_v0 }
 0x4df   : > { %3892 = vmatmul.mubr.msk.f32.vlgmr.msra.gmra.mxu1 %vm701_vm2, %v1134_v26  ;;  %3899 = vmatprep.subr.mxu0 %v4360_v0 }
 0x4e0   : > { %3929 = vmatprep.mubr.msk.f32.mxu1 %vm4361_vm0, %v4360_v0 }
 0x4e2   : > { %v1166_v27 = vpop.trf.xlu0 }
 0x4e3   : > { %3897 = vmatmul.mubr.msk.f32.vlgmr.msra.gmra.mxu0 %vm701_vm2, %v1166_v27 }
 0x4e4   : > { %3907 = vmatprep.mubr.msk.f32.mxu0 %vm4361_vm0, %v4360_v0  ;;  %3900 = vmatpush3.msra.mxu0 %v1770_v36  ;;  %v3752_v36 = vld [vmem:[%s5042_s4 + $0x30] sm:$0xff] }
 0x4e5   : > { %3901 = vmatprep.subr.mxu0 %v4360_v0 }
 0x4e6   : > { %3902 = vmatpush3.msra.mxu0 %v1769_v61 }
 0x4e7   : > { %3903 = vmatprep.subr.mxu0 %v4360_v0 }
 0x4e8   : > { %3904 = vmatpush3.msra.mxu0 %v1768_v62  ;;  %v1865_v62 = vsub.s32 6, %v4660_v7 }
 0x4e9   : > { %3905 = vmatprep.subr.mxu0 %v4360_v0 }
 0x4ea   : > { %3906 = vmatpush3.msra.mxu0 %v1767_v12 }
 0x4eb   : > { %3910 = vmatprep.subr.mxu0 %v4360_v0 }
 0x59b   : > { %v1254_v28 = vpop.f32.mrf.mxu1 }
 0x59c   : > { %1486 = vxpose.xlu1.b32.start.end [1/1] (short) (narrow) %v1254_v28, 8 }
 0x59d   : > { %v3883_v29 = vpop.f32.mrf.mxu1  ;;  %v1330_v30 = vpop.f32.mrf.mxu0 }
 0x59e   : > { %1518 = vxpose.xlu0.b32.start.end [1/1] (short) (narrow) %v1330_v30, 8 }
 0x59f   : > { %v3888_v31 = vpop.f32.mrf.mxu0  ;;  %v1406_v32 = vpop.f32.mrf.mxu1 }
 0x5a0   : > { %1550 = vxpose.xlu1.b32.start.end [1/1] (short) (narrow) %v1406_v32, 8 }
 0x5a1   : > { %v3893_v33 = vpop.f32.mrf.mxu1 }
 0x5a3   : > { %v1482_v34 = vpop.f32.mrf.mxu0 }
 0x5a4   : > { %1582 = vxpose.xlu0.b32.start.end [1/1] (short) (narrow) %v1482_v34, 8 }
 0x5a5   : > { %v3898_v35 = vpop.f32.mrf.mxu0 }
 0x5a6   : > { %v3753_v35 = vld [vmem:[%s5042_s4 + $0x38] sm:$0xff] }
 0x618   : > { %v1502_v39 = vpop.trf.xlu1 }
 0x61a   : > { %v1534_v42 = vpop.trf.xlu0 }
 0x61c   : > { %v1566_v44 = vpop.trf.xlu1 }
 0x61d   : > { %v1614_v47 = vcombine.low %v1502_v39, %v1566_v44  ;;  %v1615_v48 = vcombine.high %v1502_v39, %v1566_v44  ;;  %v1773_v39 = vsub.s32 2, %v4660_v7 }
 0x61f   : > { %v1622_v53 = vrot.slane %v1614_v47, %v4743_v46  ;;  %v1629_v54 = vrot.slane %v1615_v48, %v4743_v46  ;;  %v1774_v41 = vrot.slane %v4665_v9, %v1773_v39 }
 0x620   : > { %v1598_v49 = vpop.trf.xlu0 }
 0x621   : > { %v1630_v50 = vcombine.low %v1534_v42, %v1598_v49  ;;  %v1631_v51 = vcombine.high %v1534_v42, %v1598_v49 }
 0x623   : > { %v1638_v55 = vrot.slane %v1630_v50, %v4743_v46  ;;  %v1645_v56 = vrot.slane %v1631_v51, %v4743_v46 }
 0x625   : > { %v1646_v57 = vcombine.low %v1622_v53, %v1638_v55  ;;  %v1647_v58 = vcombine.high %v1622_v53, %v1638_v55  ;;  %v1662_v59 = vcombine.low %v1629_v54, %v1645_v56  ;;  %v1663_v60 = vcombine.high %v1629_v54, %v1645_v56  ;;  %v463_v54 = vld [vmem:[%s394_s19] sm:$0xff]  ;;  %s460_s19 = scalar_select %p459_p7, %s4444_s13, 1 }
 0x627   : > { %v1654_v63 = vrot.slane %v1646_v57, %v4746_v52  ;;  %v1661_v1 = vrot.slane %v1647_v58, %v4746_v52  ;;  %v1670_v2 = vrot.slane %v1662_v59, %v4746_v52  ;;  %v1677_v3 = vrot.slane %v1663_v60, %v4746_v52 }
 0x628   : > { %v1880_v57 = vsub.s32 1, %v4660_v7 }
 0x629   : > { %v1682_v4 = vcombine.low %v1654_v63, %v1661_v1  ;;  %v3747_v6 = vcombine.high %v1654_v63, %v1661_v1  ;;  %v1698_v10 = vcombine.low %v1670_v2, %v1677_v3  ;;  %v3748_v11 = vcombine.high %v1670_v2, %v1677_v3 }
 0x62a   : > { %v1881_v58 = vrot.slane %v4665_v9, %v1880_v57  ;;  %v1870_v63 = vsub.s32 7, %v4660_v7  ;;  %v1866_v1 = vrot.slane %v4665_v9, %v1865_v62 }
 0x62b   : > { %v1689_v13 = vrot.slane %v1682_v4, %v4743_v46  ;;  %v1697_v14 = vrot.slane %v3747_v6, %v4743_v46  ;;  %v1705_v15 = vrot.slane %v1698_v10, %v4743_v46  ;;  %v1713_v16 = vrot.slane %v3748_v11, %v4743_v46 }
 0x62c   : > { %v1871_v4 = vrot.slane %v4665_v9, %v1870_v63 }
 0x62d   : > { %v1715_v17 = vcombine.high %v1689_v13, %v1697_v14  ;;  %v1731_v18 = vcombine.high %v1705_v15, %v1713_v16  ;;  %v1714_v19 = vcombine.low %v1689_v13, %v1697_v14  ;;  %v1730_v20 = vcombine.low %v1705_v15, %v1713_v16 }
 0x62f   : > { %v1729_v21 = vrot.slane %v1715_v17, %v4746_v52  ;;  %v1745_v22 = vrot.slane %v1731_v18, %v4746_v52  ;;  %v1722_v23 = vrot.slane %v1714_v19, %v4746_v52  ;;  %v1738_v24 = vrot.slane %v1730_v20, %v4746_v52 }
 0x631   : > { %v1748_v25 = vcombine.low %v1729_v21, %v1745_v22  ;;  %v1747_v26 = vcombine.high %v1722_v23, %v1738_v24  ;;  %v1746_v27 = vcombine.low %v1722_v23, %v1738_v24  ;;  %v1749_v28 = vcombine.high %v1729_v21, %v1745_v22 }
 0x633   : > { %1755 = vrot.lane.b32.xlu0 %v1748_v25, %s4369_s5  ;;  %1751 = vrot.lane.b32.xlu1 %v1747_v26, %s4370_s16 }
 0x637   : > { %1759 = vrot.lane.b32.xlu1 %v1749_v28, %s4371_s17  ;;  %1965 = vrot.lane.b32.xlu0 %v3753_v35, %s4364_s24 }
 0x63b   : > { %1963 = vrot.lane.b32.xlu0 %v3752_v36, %s4364_s24 }
 0x63f   : > { %1961 = vrot.lane.b32.xlu0 %v3751_v37, %s4364_s24 }
 0x6a5   : > { %v1752_v29 = vpop.permute.xlu1 %1751  ;;  %v1756_v30 = vpop.permute.xlu0 %1755 }
 0x6a6   : > { %v1762_v31 = vsel %vm701_vm2, %v1746_v27, %v1752_v29 }
 0x6a7   : > { %v1764_v33 = vsel %vm1763_vm4, %v1762_v31, %v1756_v30 }
 0x6a9   : > { %v1760_v32 = vpop.permute.xlu1 %1759  ;;  %v1966_v40 = vpop.permute.xlu0 %1965 }
 0x6aa   : > { %v1766_v34 = vsel %vm1765_vm5, %v1764_v33, %v1760_v32  ;;  %3922 = vmatpush3.msra.mxu1 %v1966_v40 }
 0x6ab   : > { %3908 = vmatmul.mubr.msk.f32.vlgmr.msra.gmra.mxu0 %vm480_vm1, %v1766_v34  ;;  %3923 = vmatprep.subr.mxu1 %v4360_v0 }
 0x6ac   : > { %3918 = vmatprep.mubr.msk.f32.mxu0 %vm4361_vm0, %v4360_v0  ;;  %3911 = vmatpush3.msra.mxu0 %v3753_v35 }
 0x6ad   : > { %3912 = vmatprep.subr.mxu0 %v4360_v0  ;;  %v1964_v48 = vpop.permute.xlu0 %1963 }
 0x6ae   : > { %3913 = vmatpush3.msra.mxu0 %v3752_v36  ;;  %3924 = vmatpush3.msra.mxu1 %v1964_v48 }
 0x6af   : > { %3914 = vmatprep.subr.mxu0 %v4360_v0  ;;  %3925 = vmatprep.subr.mxu1 %v4360_v0 }
 0x6b0   : > { %3915 = vmatpush3.msra.mxu0 %v3751_v37 }
 0x6b1   : > { %3916 = vmatprep.subr.mxu0 %v4360_v0  ;;  %v1962_v49 = vpop.permute.xlu0 %1961 }
 0x6b2   : > { %3917 = vmatpush3.msra.mxu0 %v3750_v38  ;;  %3926 = vmatpush3.msra.mxu1 %v1962_v49 }
 0x6b3   : > { %3932 = vmatprep.subr.mxu0 %v4360_v0  ;;  %3927 = vmatprep.subr.mxu1 %v4360_v0 }
 0x76b   : > { %v1844_v42 = vpop.f32.mrf.mxu0 }
 0x76c   : > { %v1845_v43 = vadd.f32 %v1844_v42, %v1774_v41 }
 0x76d   : > { %v3909_v44 = vpop.f32.mrf.mxu0 }
 0x76e   : > { %v1848_v45 = vadd.f32 %v1845_v43, %v4652_v5 }
 0x770   : > { %v1849_v47 = vsel %vm480_vm1, %v1848_v45, 0.0 }
 0x771   : > { %1850 = vadd.xlane.f32.xlu1 %v1849_v47 }
 0x782   : > { %1959 = vrot.lane.b32.xlu1 %v3750_v38, %s4364_s24 }
 0x7fa   : > { %v1851_v50 = vpop.xlane.xlu1 %1850 }
 0x7fb   : > { %v1853_v51 = vmul.f32 0.03125, %v1851_v50 }
 0x7fd   : > { %v1854_v53 = vsub.f32 %v1848_v45, %v1853_v51 }
 0x7fe   : > { %v1960_v55 = vpop.permute.xlu1 %1959 }
 0x7ff   : > { %v1855_v5 = vmul.f32 %v1854_v53, %v1854_v53  ;;  %3928 = vmatpush3.msra.mxu1 %v1960_v55 }
 0x800   : > { %3930 = vmatmul.mubr.msk.f32.vlgmr.msra.gmra.mxu1 %vm480_vm1, %v463_v54  ;;  %3942 = vmatprep.subr.mxu1 %v4360_v0 }
 0x801   : > { %v1856_v56 = vsel %vm480_vm1, %v1855_v5, 0.0  ;;  %3944 = vmatprep.mubr.msk.f32.mxu1 %vm4361_vm0, %v4360_v0 }
 0x802   : > { %1857 = vadd.xlane.f32.xlu0 %v1856_v56 }
 0x818   : > { %1972 = vrot.lane.b32.xlu0 %v1881_v58, %s4364_s24 }
 0x88b   : > { %v1858_v59 = vpop.xlane.xlu0 %1857 }
 0x88c   : > { %v1859_v60 = vmul.f32 0.03125, %v1858_v59 }
 0x88e   : > { %v1860_v61 = vadd.f32 1e-05, %v1859_v60 }
 0x88f   : > { %v1973_v11 = vpop.permute.xlu0 %1972 }
 0x890   : > { %4120 = vrsqrt.f32 %v1860_v61 }
 0x89d   : > { %v4121_v2 = vpop.eup %4120 }
 0x89e   : > { %v1862_v3 = vmul.f32 %v4121_v2, %v1854_v53 }
 0x8a0   : > { %v1867_v6 = vmul.f32 %v1866_v1, %v1862_v3 }
 0x8a2   : > { %v4821_v10 = vadd.f32 %v1871_v4, %v1867_v6 }
 0x8a4   : > { %3919 = vmatmul.mubr.msk.f32.vlgmr.msra.gmra.mxu0 %vm480_vm1, %v4821_v10 }
 0x8a5   : > { %3934 = vmatprep.mubr.msk.f32.mxu0 %vm4361_vm0, %v4360_v0 }
 0x8c0   : > { %v2044_v12 = vpop.f32.mrf.mxu1 }
 0x8c1   : > { %v4827_v13 = vadd.f32 %v2044_v12, %v1973_v11 }
 0x8c2   : > { %v3931_v14 = vpop.f32.mrf.mxu1 }
 0x8c3   : > { %2056 = vrot.lane.b32.xlu1 %v4827_v13, %s4363_s21 }
 0x8c7   : > { %2059 = vrot.lane.b32.xlu1 %v4827_v13, %s4365_s27 }
 0x8cb   : > { %2062 = vrot.lane.b32.xlu1 %v4827_v13, %s4362_s22 }
 0x935   : > { %v4835_v9 = vpop.permute.xlu1 %2056 }
 0x936   : > { %2097 = vxpose.xlu0.b32.start.end [1/1] (short) (narrow) %v4835_v9, 8 }
 0x939   : > { %v4838_v15 = vpop.permute.xlu1 %2059 }
 0x93a   : > { %2129 = vxpose.xlu0.b32.start.end [1/1] (short) (narrow) %v4838_v15, 8 }
 0x93d   : > { %v2063_v19 = vpop.permute.xlu1 %2062 }
 0x964   : > { %v1951_v16 = vpop.f32.mrf.mxu0 }
 0x965   : > { %v1952_v17 = vadd.f32 %v1951_v16, %v1881_v58 }
 0x966   : > { %v3920_v18 = vpop.f32.mrf.mxu0 }
 0x967   : > { %2053 = vrot.lane.b32.xlu0 %v1952_v17, %s4362_s22  ;;  %2049 = vrot.lane.b32.xlu1 %v1952_v17, %s4363_s21  ;;  %s461_s22 = scalar_lea.vmem %s5041_s3, %s460_s19  ;;  %s4372_s19 = smov [#allocation11]  }
 0x968   : > { %v469_v29 = vld [vmem:[%s461_s22] sm:$0x1]  ;;  %s4283_s23 = sshll.u32 %s4372_s19, 4  ;;  %s4284_s23 = int_to_ptr.vmem [resolvable:$false] %s4283_s23 }
 0x969   : > { %vm470_vm6 = vcmp.eq.f32.partialorder %v469_v29, 0.0  ;;  %p4286_p4 = scmp.lt.s32.totalorder %s3576_s26, %s4284_s23 }
 0x96a   : > { %v471_v30 = vsel %vm470_vm6, -1e+09, %v4360_v0 }
 0x96b   : > { %2051 = vrot.lane.b32.xlu1 %v1952_v17, %s4365_s27  ;;  %v2489_v34 = vrot.slane %v471_v30, %v4663_v8 }
 0x985   : > { %2161 = vxpose.xlu0.b32.start.end [1/1] (short) (narrow) %v2063_v19, 8 }
 0x994   : > { %2065 = vxpose.xlu1.b32.start.end [1/1] (short) (narrow) %v4827_v13, 8 }
 0x9b2   : > { %v2113_v20 = vpop.trf.xlu0 }
 0x9b6   : > { %v2145_v21 = vpop.trf.xlu0 }
 0x9b7   : > { %3943 = vmatpush3.msra.mxu1 %v2145_v21 }
 0x9b8   : > { %3952 = vmatprep.subr.mxu1 %v4360_v0 }
 0x9d9   : > { %v2050_v22 = vpop.permute.xlu1 %2049  ;;  %v2054_v24 = vpop.permute.xlu0 %2053 }
 0x9dd   : > { %v2052_v23 = vpop.permute.xlu1 %2051 }
 0x9de   : > { %3945 = vmatmul.mubr.msk.f32.vlgmr.msra.gmra.mxu1 %vm701_vm2, %v2052_v23 }
 0x9df   : > { %3954 = vmatprep.mubr.msk.f32.mxu1 %vm4361_vm0, %v4360_v0 }
 0xa01   : > { %v2177_v26 = vpop.trf.xlu0 }
 0xa10   : > { %v2081_v25 = vpop.trf.xlu1 }
 0xa11   : > { %3933 = vmatpush3.msra.mxu0 %v2081_v25 }
 0xa12   : > { %3935 = vmatmul.mubr.msk.f32.vlgmr.msra.gmra.mxu0 %vm701_vm2, %v1952_v17  ;;  %3937 = vmatprep.subr.mxu0 %v4360_v0 }
 0xa13   : > { %3938 = vmatpush3.msra.mxu0 %v2113_v20  ;;  %3939 = vmatprep.mubr.msk.f32.mxu0 %vm4361_vm0, %v4360_v0 }
 0xa14   : > { %3947 = vmatprep.subr.mxu0 %v4360_v0 }
 0xa16   : > { %3940 = vmatmul.mubr.msk.f32.vlgmr.msra.gmra.mxu0 %vm701_vm2, %v2050_v22 }
 0xa17   : > { %3948 = vmatpush3.msra.mxu0 %v2177_v26  ;;  %3949 = vmatprep.mubr.msk.f32.mxu0 %vm4361_vm0, %v4360_v0 }
 0xa18   : > { %3957 = vmatprep.subr.mxu0 %v4360_v0 }
 0xa1a   : > { %3950 = vmatmul.mubr.msk.f32.vlgmr.msra.gmra.mxu0 %vm701_vm2, %v2054_v24 }
 0xa1b   : > { %3959 = vmatprep.mubr.msk.f32.mxu0 %vm4361_vm0, %v4360_v0 }
 0xa9e   : > { %v2405_v27 = vpop.f32.mrf.mxu1 }
 0xa9f   : > { %v2483_v32 = vmul.f32 0.35355338, %v2405_v27 }
 0xaa0   : > { %v3946_v28 = vpop.f32.mrf.mxu1 }
 0xaa1   : > { %v2493_v41 = vadd.f32 %v2489_v34, %v2483_v32 }
 0xaa3   : > { %v2501_v47 = vsel %vm701_vm2, %v2493_v41, -inf }
 0xad2   : > { %v2261_v31 = vpop.f32.mrf.mxu0 }
 0xad3   : > { %v2481_v33 = vmul.f32 0.35355338, %v2261_v31 }
 0xad4   : > { %v3936_v35 = vpop.f32.mrf.mxu0 }
 0xad5   : > { %v2491_v36 = vadd.f32 %v2489_v34, %v2481_v33 }
 0xad6   : > { %v2333_v37 = vpop.f32.mrf.mxu0 }
 0xad7   : > { %v2482_v38 = vmul.f32 0.35355338, %v2333_v37  ;;  %v2495_v40 = vsel %vm701_vm2, %v2491_v36, -inf }
 0xad8   : > { %2496 = vmax.xlane.f32.xlu1 %v2495_v40  ;;  %v3941_v42 = vpop.f32.mrf.mxu0 }
 0xad9   : > { %v2492_v43 = vadd.f32 %v2489_v34, %v2482_v38 }
 0xada   : > { %v2477_v44 = vpop.f32.mrf.mxu0 }
 0xadb   : > { %v2484_v45 = vmul.f32 0.35355338, %v2477_v44  ;;  %v2498_v48 = vsel %vm701_vm2, %v2492_v43, -inf }
 0xadc   : > { %2502 = vmax.xlane.f32.xlu1 %v2501_v47  ;;  %2499 = vmax.xlane.f32.xlu0 %v2498_v48  ;;  %v3951_v49 = vpop.f32.mrf.mxu0 }
 0xadd   : > { %v2494_v50 = vadd.f32 %v2489_v34, %v2484_v45 }
 0xadf   : > { %v2504_v51 = vsel %vm701_vm2, %v2494_v50, -inf }
 0xae0   : > { %2505 = vmax.xlane.f32.xlu1 %v2504_v51 }
 0xaf1   : > { %2541 = vrot.lane.b32.xlu1 %v4835_v9, %s4364_s24 }
 0xaf2   : > { %2539 = vrot.lane.b32.xlu0 %v4827_v13, %s4364_s24 }
 0xaf5   : > { %2545 = vrot.lane.b32.xlu1 %v2063_v19, %s4364_s24 }
 0xaf6   : > { %2543 = vrot.lane.b32.xlu0 %v4838_v15, %s4364_s24 }
 0xb61   : > { %v2497_v53 = vpop.xlane.xlu1 %2496 }
 0xb62   : > { %v2507_v54 = vsub.f32 %v2491_v36, %v2497_v53 }
 0xb64   : > { %v2511_v55 = vmul.f32 1.442695, %v2507_v54 }
 0xb65   : > { %v2503_v5 = vpop.xlane.xlu1 %2502  ;;  %v2500_v56 = vpop.xlane.xlu0 %2499 }
 0xb66   : > { %4122 = vpow2.f32 %v2511_v55  ;;  %v2509_v58 = vsub.f32 %v2493_v41, %v2503_v5  ;;  %v2508_v59 = vsub.f32 %v2492_v43, %v2500_v56  ;;  %v3266_v43 = vld [vmem:[#allocation8 + $0x38] sm:$0xff] }
 0xb68   : > { %v2515_v60 = vmul.f32 1.442695, %v2509_v58  ;;  %v2513_v61 = vmul.f32 1.442695, %v2508_v59 }
 0xb69   : > { %v2506_v62 = vpop.xlane.xlu1 %2505  ;;  %v2540_v9 = vpop.permute.xlu0 %2539 }
 0xb6a   : > { %4124 = vpow2.f32 %v2515_v60  ;;  %v2510_v63 = vsub.f32 %v2494_v50, %v2506_v62  ;;  %v3265_v62 = vld [vmem:[#allocation8 + $0x30] sm:$0xff] }
 0xb6b   : > { %4126 = vpow2.f32 %v2513_v61 }
 0xb6c   : > { %v2517_v1 = vmul.f32 1.442695, %v2510_v63  ;;  %v3264_v63 = vld [vmem:[#allocation8 + $0x28] sm:$0xff] }
 0xb6d   : > { %v2542_v15 = vpop.permute.xlu1 %2541  ;;  %v2544_v16 = vpop.permute.xlu0 %2543 }
 0xb6e   : > { %4128 = vpow2.f32 %v2517_v1 }
 0xb71   : > { %v2546_v17 = vpop.permute.xlu1 %2545 }
 0xb73   : > { %v4123_v2 = vpop.eup %4122 }
 0xb74   : > { %v2519_v3 = vsel %vm701_vm2, %v4123_v2, 0.0 }
 0xb75   : > { %2520 = vadd.xlane.f32.xlu1 %v2519_v3 }
 0xb77   : > { %v4125_v4 = vpop.eup %4124 }
 0xb78   : > { %v4127_v6 = vpop.eup %4126  ;;  %v2525_v11 = vsel %vm701_vm2, %v4125_v4, 0.0 }
 0xb79   : > { %v2522_v12 = vsel %vm701_vm2, %v4127_v6, 0.0  ;;  %2526 = vadd.xlane.f32.xlu1 %v2525_v11 }
 0xb7a   : > { %2523 = vadd.xlane.f32.xlu0 %v2522_v12 }
 0xb7b   : > { %v4129_v13 = vpop.eup %4128 }
 0xb7c   : > { %v2528_v14 = vsel %vm701_vm2, %v4129_v13, 0.0 }
 0xb7e   : > { %2529 = vadd.xlane.f32.xlu0 %v2528_v14  ;;  %v3263_v14 = vld [vmem:[#allocation8 + $0x20] sm:$0xff] }
 0xbab   : > { %2551 = vxpose.xlu0.b32.start.end [1/1] (short) (narrow) %v2540_v9, 8 }
 0xbac   : > { %2583 = vxpose.xlu1.b32.start.end [1/1] (short) (narrow) %v2542_v15, 8 }
 0xbaf   : > { %2615 = vxpose.xlu0.b32.start.end [1/1] (short) (narrow) %v2544_v16, 8 }
 0xbb3   : > { %2647 = vxpose.xlu0.b32.start.end [1/1] (short) (narrow) %v2546_v17, 8 }
 0xbfe   : > { %v2521_v18 = vpop.xlane.xlu1 %2520 }
 0xbff   : > { %4130 = vrcp.f32 %v2521_v18 }
 0xc02   : > { %v2527_v24 = vpop.xlane.xlu1 %2526 }
 0xc03   : > { %v2524_v19 = vpop.xlane.xlu0 %2523 }
 0xc04   : > { %4132 = vrcp.f32 %v2524_v19 }
 0xc05   : > { %4134 = vrcp.f32 %v2527_v24 }
 0xc07   : > { %v2530_v25 = vpop.xlane.xlu0 %2529 }
 0xc08   : > { %4136 = vrcp.f32 %v2530_v25 }
 0xc0c   : > { %v4131_v20 = vpop.eup %4130 }
 0xc0d   : > { %v2535_v21 = vmul.f32 %v4131_v20, %v4123_v2 }
 0xc0f   : > { %3953 = vmatpush3.xpose.msk.msra.mxu1 %vm701_vm2, %v2535_v21 }
 0xc10   : > { %3962 = vmatprep.subr.mxu1 %v4360_v0 }
 0xc11   : > { %v4133_v22 = vpop.eup %4132 }
 0xc12   : > { %v2536_v23 = vmul.f32 %v4133_v22, %v4127_v6  ;;  %v4135_v26 = vpop.eup %4134 }
 0xc13   : > { %v2537_v29 = vmul.f32 %v4135_v26, %v4125_v4 }
 0xc14   : > { %3958 = vmatpush3.xpose.msk.msra.mxu0 %vm701_vm2, %v2536_v23 }
 0xc15   : > { %3967 = vmatprep.subr.mxu0 %v4360_v0  ;;  %v4137_v27 = vpop.eup %4136 }
 0xc16   : > { %v2538_v31 = vmul.f32 %v4137_v27, %v4129_v13 }
 0xc27   : > { %v2567_v28 = vpop.trf.xlu0 }
 0xc28   : > { %3955 = vmatmul.mubr.msk.f32.vlgmr.msra.gmra.mxu1 %vm701_vm2, %v2567_v28  ;;  %v2599_v30 = vpop.trf.xlu1 }
 0xc29   : > { %3963 = vmatpush3.xpose.msk.msra.mxu1 %vm701_vm2, %v2537_v29  ;;  %3960 = vmatmul.mubr.msk.f32.vlgmr.msra.gmra.mxu0 %vm701_vm2, %v2599_v30 }
 0xc2a   : > { %3968 = vmatpush3.xpose.msk.msra.mxu0 %vm701_vm2, %v2538_v31  ;;  %3964 = vmatprep.mubr.msk.f32.mxu1 %vm4361_vm0, %v4360_v0 }
 0xc2b   : > { %v2631_v32 = vpop.trf.xlu0  ;;  %3969 = vmatprep.mubr.msk.f32.mxu0 %vm4361_vm0, %v4360_v0  ;;  %3972 = vmatprep.subr.mxu1 %v4360_v0 }
 0xc2c   : > { %3965 = vmatmul.mubr.msk.f32.vlgmr.msra.gmra.mxu1 %vm701_vm2, %v2631_v32  ;;  %3983 = vmatprep.subr.mxu0 %v4360_v0 }
 0xc2d   : > { %3980 = vmatprep.mubr.msk.f32.mxu1 %vm4361_vm0, %v4360_v0  ;;  %3973 = vmatpush3.msra.mxu1 %v3266_v43 }
 0xc2e   : > { %3974 = vmatprep.subr.mxu1 %v4360_v0 }
 0xc2f   : > { %v2663_v33 = vpop.trf.xlu0  ;;  %3975 = vmatpush3.msra.mxu1 %v3265_v62 }
 0xc30   : > { %3970 = vmatmul.mubr.msk.f32.vlgmr.msra.gmra.mxu0 %vm701_vm2, %v2663_v33  ;;  %3976 = vmatprep.subr.mxu1 %v4360_v0 }
 0xc31   : > { %3991 = vmatprep.mubr.msk.f32.mxu0 %vm4361_vm0, %v4360_v0  ;;  %3977 = vmatpush3.msra.mxu1 %v3264_v63 }
 0xc32   : > { %3978 = vmatprep.subr.mxu1 %v4360_v0 }
 0xc33   : > { %3979 = vmatpush3.msra.mxu1 %v3263_v14 }
 0xc34   : > { %3994 = vmatprep.subr.mxu1 %v4360_v0 }
 0xce8   : > { %v2751_v34 = vpop.f32.mrf.mxu1 }
 0xce9   : > { %2983 = vxpose.xlu1.b32.start.end [1/1] (short) (narrow) %v2751_v34, 8  ;;  %v2827_v35 = vpop.f32.mrf.mxu0 }
 0xcea   : > { %v3956_v36 = vpop.f32.mrf.mxu1  ;;  %3015 = vxpose.xlu0.b32.start.end [1/1] (short) (narrow) %v2827_v35, 8  ;;  %v4933_v35 = vld [vmem:[#allocation10] sm:$0xff] }
 0xceb   : > { %v3961_v37 = vpop.f32.mrf.mxu0 }
 0xcec   : > { %v2903_v38 = vpop.f32.mrf.mxu1 }
 0xced   : > { %3047 = vxpose.xlu1.b32.start.end [1/1] (short) (narrow) %v2903_v38, 8 }
 0xcee   : > { %v3966_v40 = vpop.f32.mrf.mxu1 }
 0xcf0   : > { %v2979_v41 = vpop.f32.mrf.mxu0 }
 0xcf1   : > { %3079 = vxpose.xlu0.b32.start.end [1/1] (short) (narrow) %v2979_v41, 8 }
 0xcf2   : > { %v3971_v42 = vpop.f32.mrf.mxu0 }
 0xd65   : > { %v2999_v44 = vpop.trf.xlu1 }
 0xd66   : > { %v3031_v45 = vpop.trf.xlu0 }
 0xd69   : > { %v3063_v47 = vpop.trf.xlu1 }
 0xd6a   : > { %v3111_v48 = vcombine.low %v2999_v44, %v3063_v47  ;;  %v3112_v49 = vcombine.high %v2999_v44, %v3063_v47 }
 0xd6c   : > { %v3119_v54 = vrot.slane %v3111_v48, %v4743_v46  ;;  %v3126_v55 = vrot.slane %v3112_v49, %v4743_v46  ;;  %v3371_v49 = vld [vmem:[%s5044_s6 + $0x18] sm:$0xff] }
 0xd6d   : > { %v3095_v50 = vpop.trf.xlu0  ;;  %3984 = vmatpush3.msra.mxu0 %v3371_v49 }
 0xd6e   : > { %v3127_v51 = vcombine.low %v3031_v45, %v3095_v50  ;;  %v3128_v53 = vcombine.high %v3031_v45, %v3095_v50  ;;  %v3370_v50 = vld [vmem:[%s5044_s6 + $0x10] sm:$0xff]  ;;  %3985 = vmatprep.subr.mxu0 %v4360_v0 }
 0xd6f   : > { %3986 = vmatpush3.msra.mxu0 %v3370_v50 }
 0xd70   : > { %v3135_v5 = vrot.slane %v3127_v51, %v4743_v46  ;;  %v3142_v56 = vrot.slane %v3128_v53, %v4743_v46  ;;  %3987 = vmatprep.subr.mxu0 %v4360_v0  ;;  %v3368_v51 = vld [vmem:[%s5044_s6] sm:$0xff]  ;;  %v3457_v53 = vld [vmem:[%s5045_s7 + $0x38] sm:$0xff] }
 0xd72   : > { %v3143_v58 = vcombine.low %v3119_v54, %v3135_v5  ;;  %v3144_v59 = vcombine.high %v3119_v54, %v3135_v5  ;;  %v3159_v60 = vcombine.low %v3126_v55, %v3142_v56  ;;  %v3160_v61 = vcombine.high %v3126_v55, %v3142_v56  ;;  %v3456_v54 = vld [vmem:[%s5045_s7 + $0x30] sm:$0xff]  ;;  %v3455_v55 = vld [vmem:[%s5045_s7 + $0x28] sm:$0xff]  ;;  %v3454_v5 = vld [vmem:[%s5045_s7 + $0x20] sm:$0xff] }
 0xd73   : > { %v3453_v56 = vld [vmem:[%s5045_s7 + $0x18] sm:$0xff] }
 0xd74   : > { %v3151_v1 = vrot.slane %v3143_v58, %v4746_v52  ;;  %v3158_v2 = vrot.slane %v3144_v59, %v4746_v52  ;;  %v3167_v3 = vrot.slane %v3159_v60, %v4746_v52  ;;  %v3174_v4 = vrot.slane %v3160_v61, %v4746_v52  ;;  %v465_v61 = vld [vmem:[#allocation10 + $0x8] sm:$0xf] }
 0xd75   : > { %v3361_v62 = vrot.slane %v465_v61, %v4663_v8  ;;  %v3451_v8 = vld [vmem:[%s5045_s7 + $0x8] sm:$0xff] }
 0xd76   : > { %v3179_v6 = vcombine.low %v3151_v1, %v3158_v2  ;;  %v3768_v11 = vcombine.high %v3151_v1, %v3158_v2  ;;  %v3195_v12 = vcombine.low %v3167_v3, %v3174_v4  ;;  %v3769_v13 = vcombine.high %v3167_v3, %v3174_v4 }
 0xd77   : > { %v3366_v1 = vrot.slane %v465_v61, %v1880_v57  ;;  %v3450_v57 = vld [vmem:[%s5045_s7] sm:$0xff] }
 0xd78   : > { %v3186_v9 = vrot.slane %v3179_v6, %v4743_v46  ;;  %v3194_v15 = vrot.slane %v3768_v11, %v4743_v46  ;;  %v3202_v16 = vrot.slane %v3195_v12, %v4743_v46  ;;  %v3210_v17 = vrot.slane %v3769_v13, %v4743_v46  ;;  %v3452_v6 = vld [vmem:[%s5045_s7 + $0x10] sm:$0xff] }
 0xd79   : > { %v3374_v11 = vsub.s32 4, %v4660_v7 }
 0xd7a   : > { %v3212_v18 = vcombine.high %v3186_v9, %v3194_v15  ;;  %v3228_v19 = vcombine.high %v3202_v16, %v3210_v17  ;;  %v3211_v20 = vcombine.low %v3186_v9, %v3194_v15  ;;  %v3227_v21 = vcombine.low %v3202_v16, %v3210_v17 }
 0xd7b   : > { %v3375_v12 = vrot.slane %v4933_v35, %v3374_v11  ;;  %v3460_v16 = vsub.s32 5, %v4660_v7 }
 0xd7c   : > { %v3226_v22 = vrot.slane %v3212_v18, %v4746_v52  ;;  %v3242_v23 = vrot.slane %v3228_v19, %v4746_v52  ;;  %v3219_v24 = vrot.slane %v3211_v20, %v4746_v52  ;;  %v3235_v25 = vrot.slane %v3227_v21, %v4746_v52 }
 0xd7d   : > { %v3269_v52 = vsub.s32 3, %v4660_v7  ;;  %v3461_v17 = vrot.slane %v4933_v35, %v3460_v16 }
 0xd7e   : > { %v3245_v26 = vcombine.low %v3226_v22, %v3242_v23  ;;  %v3244_v27 = vcombine.high %v3219_v24, %v3235_v25  ;;  %v3243_v28 = vcombine.low %v3219_v24, %v3235_v25  ;;  %v3246_v46 = vcombine.high %v3226_v22, %v3242_v23 }
 0xd7f   : > { %v3270_v36 = vrot.slane %v4933_v35, %v3269_v52 }
 0xd80   : > { %3252 = vrot.lane.b32.xlu0 %v3245_v26, %s4369_s5  ;;  %3248 = vrot.lane.b32.xlu1 %v3244_v27, %s4370_s16  ;;  %s5093_s16 = sld [smem:[#allocation21_spill]] }
 0xd84   : > { %3256 = vrot.lane.b32.xlu1 %v3246_v46, %s4371_s17  ;;  %s3774_s17 = sshll.u32 %s4444_s13, 7  ;;  %s4285_s13 = scalar_lea.vmem %s4284_s23, 256 }
 0xd85   : > { %s3573_s30 = scalar_lea.hbm %s5094_s9, %s3774_s17  ;;  %p4287_p8 = scmp.lt.s32.totalorder %s4285_s13, %s4279_s28 }
 0xd86   : > { %p5095_p3 = scmp.ne.s32.totalorder %s5093_s16, 0 }
 0xd87   : > { %p4288_p11 = por %p4287_p8, %p4286_p4 }
 0xd88   : > { %p4281_p5 = pnand %p4280_p0, %p5095_p3 }
 0xd8a   : > { %p4282_p2 = pneg %p4281_p5 }
 0xd8c   : > { %p4289_p13 = pnand %p4288_p11, %p4282_p2 }
 0xdf2   : > { %v3249_v29 = vpop.permute.xlu1 %3248  ;;  %v3253_v30 = vpop.permute.xlu0 %3252 }
 0xdf3   : > { %v3259_v31 = vsel %vm701_vm2, %v3243_v28, %v3249_v29  ;;  %v3553_v29 = vrot.slane %v465_v61, %v1773_v39 }
 0xdf4   : > { %v3260_v33 = vsel %vm1763_vm4, %v3259_v31, %v3253_v30  ;;  %v3558_v31 = vrot.slane %v465_v61, %v3269_v52 }
 0xdf6   : > { %v3257_v32 = vpop.permute.xlu1 %3256 }
 0xdf7   : > { %v3261_v34 = vsel %vm1765_vm5, %v3260_v33, %v3257_v32 }
 0xdf8   : > { %3981 = vmatmul.mubr.msk.f32.vlgmr.msra.gmra.mxu1 %vm480_vm1, %v3261_v34 }
 0xdf9   : > { %4010 = vmatprep.mubr.msk.f32.mxu1 %vm4361_vm0, %v4360_v0  ;;  %3995 = vmatpush3.msra.mxu1 %v3457_v53 }
 0xdfa   : > { %3996 = vmatprep.subr.mxu1 %v4360_v0 }
 0xdfb   : > { %3997 = vmatpush3.msra.mxu1 %v3456_v54 }
 0xdfc   : > { %3998 = vmatprep.subr.mxu1 %v4360_v0 }
 0xdfd   : > { %3999 = vmatpush3.msra.mxu1 %v3455_v55 }
 0xdfe   : > { %4000 = vmatprep.subr.mxu1 %v4360_v0 }
 0xdff   : > { %4001 = vmatpush3.msra.mxu1 %v3454_v5 }
 0xe00   : > { %4002 = vmatprep.subr.mxu1 %v4360_v0 }
 0xe01   : > { %4003 = vmatpush3.msra.mxu1 %v3453_v56 }
 0xe02   : > { %4004 = vmatprep.subr.mxu1 %v4360_v0 }
 0xe03   : > { %4005 = vmatpush3.msra.mxu1 %v3452_v6 }
 0xe04   : > { %4006 = vmatprep.subr.mxu1 %v4360_v0 }
 0xe05   : > { %4007 = vmatpush3.msra.mxu1 %v3451_v8 }
 0xe06   : > { %4008 = vmatprep.subr.mxu1 %v4360_v0 }
 0xe07   : > { %4009 = vmatpush3.msra.mxu1 %v3450_v57 }
 0xeb8   : > { %v3340_v37 = vpop.f32.mrf.mxu1 }
 0xeb9   : > { %v3341_v38 = vadd.f32 %v3340_v37, %v3270_v36 }
 0xeba   : > { %v3982_v40 = vpop.f32.mrf.mxu1 }
 0xebb   : > { %v3344_v41 = vadd.f32 %v3341_v38, %v4821_v10  ;;  %v3369_v10 = vld [vmem:[%s5044_s6 + $0x8] sm:$0xff] }
 0xebc   : > { %3988 = vmatpush3.msra.mxu0 %v3369_v10 }
 0xebd   : > { %v3345_v42 = vsel %vm480_vm1, %v3344_v41, 0.0  ;;  %3989 = vmatprep.subr.mxu0 %v4360_v0 }
 0xebe   : > { %3346 = vadd.xlane.f32.xlu1 %v3345_v42  ;;  %3990 = vmatpush3.msra.mxu0 %v3368_v51 }
 0xf47   : > { %v3347_v43 = vpop.xlane.xlu1 %3346 }
 0xf48   : > { %v3348_v44 = vmul.f32 0.03125, %v3347_v43 }
 0xf4a   : > { %v3349_v45 = vsub.f32 %v3344_v41, %v3348_v44 }
 0xf4c   : > { %v3350_v47 = vmul.f32 %v3349_v45, %v3349_v45 }
 0xf4e   : > { %v3351_v48 = vsel %vm480_vm1, %v3350_v47, 0.0 }
 0xf4f   : > { %3352 = vadd.xlane.f32.xlu0 %v3351_v48 }
 0xfd8   : > { %v3353_v58 = vpop.xlane.xlu0 %3352 }
 0xfd9   : > { %v3354_v59 = vmul.f32 0.03125, %v3353_v58 }
 0xfdb   : > { %v3355_v60 = vadd.f32 1e-05, %v3354_v59 }
 0xfdd   : > { %4138 = vrsqrt.f32 %v3355_v60 }
 0xfea   : > { %v4139_v63 = vpop.eup %4138 }
 0xfeb   : > { %v3357_v2 = vmul.f32 %v4139_v63, %v3349_v45 }
 0xfed   : > { %v3362_v3 = vmul.f32 %v3361_v62, %v3357_v2 }
 0xfef   : > { %v3367_v4 = vadd.f32 %v3366_v1, %v3362_v3 }
 0xff1   : > { %3992 = vmatmul.mubr.msk.f32.vlgmr.msra.gmra.mxu0 %vm480_vm1, %v3367_v4 }
0x10b1   : > { %v3445_v13 = vpop.f32.mrf.mxu0 }
0x10b2   : > { %v3446_v14 = vadd.f32 %v3445_v13, %v3375_v12 }
0x10b3   : > { %v3993_v9 = vpop.f32.mrf.mxu0 }
0x10b4   : > { %v3449_v15 = vmax.f32 %v3446_v14, 0.0 }
0x10b6   : > { %4011 = vmatmul.mubr.msk.f32.vlgmr.msra.gmra.mxu1 %vm3462_vm7, %v3449_v15 }
0x1176   : > { %v3532_v18 = vpop.f32.mrf.mxu1 }
0x1177   : > { %v3533_v19 = vadd.f32 %v3532_v18, %v3461_v17 }
0x1178   : > { %v4012_v20 = vpop.f32.mrf.mxu1 }
0x1179   : > { %v3536_v21 = vadd.f32 %v3533_v19, %v3367_v4 }
0x117b   : > { %v3537_v0 = vsel %vm480_vm1, %v3536_v21, 0.0 }
0x117c   : > { %3538 = vadd.xlane.f32.xlu1 %v3537_v0 }
0x1205   : > { %v3539_v22 = vpop.xlane.xlu1 %3538 }
0x1206   : > { %v3540_v23 = vmul.f32 0.03125, %v3539_v22 }
0x1208   : > { %v3541_v24 = vsub.f32 %v3536_v21, %v3540_v23 }
0x120a   : > { %v3542_v25 = vmul.f32 %v3541_v24, %v3541_v24 }
0x120c   : > { %v3543_v26 = vsel %vm480_vm1, %v3542_v25, 0.0 }
0x120d   : > { %3544 = vadd.xlane.f32.xlu0 %v3543_v26 }
0x1296   : > { %v3545_v27 = vpop.xlane.xlu0 %3544 }
0x1297   : > { %v3546_v28 = vmul.f32 0.03125, %v3545_v27 }
0x1299   : > { %v3547_v46 = vadd.f32 1e-05, %v3546_v28 }
0x129b   : > { %4140 = vrsqrt.f32 %v3547_v46 }
0x12a8   : > { %v4141_v30 = vpop.eup %4140 }
0x12a9   : > { %v3549_v32 = vmul.f32 %v4141_v30, %v3541_v24 }
0x12ab   : > { %v3554_v33 = vmul.f32 %v3553_v29, %v3549_v32 }
0x12ad   : > { %v3559_v34 = vadd.f32 %v3558_v31, %v3554_v33 }
0x12af   : > { %3560 = vst.msk [vmem:[%s458_s18] sm:$0xff] %vm480_vm1, %v3559_v34 }
0x12b0   : > { %4292 = shalt.err (!%p4289_p13)
}
0x12b1   : > { %s4293_s29 = scalar_lea.hbm %s3573_s30, 128  ;;  %s4297_s22 = scalar_lea.hbm %s5094_s9, 256 }
0x12b2   : > { %p4294_p1 = scmp.ne.s32.totalorder %s3573_s30, %s4293_s29  ;;  %p4298_p9 = scmp.lt.s32.totalorder %s3573_s30, %s5094_s9 }
0x12b3   : > { %p4299_p12 = scmp.lt.s32.totalorder %s4297_s22, %s4293_s29 }
0x12b4   : > { %p4295_p6 = pnand %p4294_p1, %p5095_p3 }
0x12b5   : > { %p4300_p7 = por %p4299_p12, %p4298_p9 }
0x12b6   : > { %p4296_p10 = pneg %p4295_p6 }
0x12b8   : > { %p4301_p0 = pnand %p4300_p7, %p4296_p10 }
0x12ba   : > { %4304 = shalt.err (!%p4301_p0)
}
0x12bb   : > { %4027 = dma.vmem_to_hbm [thread:$0]  (%p5095_p3), %s3576_s26, 128, %s3573_s30, %s3562_s14  }
0x12bc PF: > { %s5096_s27 = sld [smem:[#allocation16_spill]] }
0x12bd   : > { %s5097_s25 = sld [smem:[#allocation18_spill]] }
0x12be   : > { %s5098_s5 = sld [smem:[#allocation17_spill]] }
0x12c2   : > { %s3587_s17 = sand.u32 1, %s5096_s27  }
0x12c3   : > { %p5099_p5 = scmp.ne.s32.totalorder %s5097_s25, 0  ;;  %s3588_s18 = scalar_lea.sflag [#allocation4], %s3587_s17 }
0x12c4   : > { %p5100_p2 = scmp.ge.s32.totalorder %s5098_s5, 2 }
0x12c6   : > { %p4047_p4 = pnand %p5100_p2, %p5099_p5 }
0x12c8   : > { %p4048_p8 = pneg %p4047_p4 }
0x12ca   : > { %4334 = dma.done.wait (%p4048_p8), %s3588_s18, 128  }
0x12cb   : > { %4336 = vsyncadd (%p4048_p8), %s3588_s18, 4294967168  ;;  %s5101_s12 = sld [smem:[#allocation19_spill]]  ;;  %s5103_s30 = smov %s4343_s10 }
0x12cc   : > { %s5102_s15 = sld [smem:[#allocation20_spill]]  ;;  %s5104_s10 = smov %s4347_s11 }
0x12d1   : > { %p26_p11 = scmp.ge.s32.totalorder %s5101_s12, 4  }
0x12d2   : > { %s5105_s11 = smov %s5102_s15 }
0x12d3   :  { %28 = sbr.rel (!%p26_p11) target bundleno = 12 (0xc), region = 138 }
0x12d8   :  { %3593 = vsyncpa [#allocation3], 1 }
0x12d9   :  { %3595 = vsyncpa [#allocation3 + $0x1], 1 }
0x12da   :  { %3596 = vsyncpa [#allocation6], 1 }
0x12db   :  { %3598 = vsyncpa [#allocation6 + $0x1], 1 }
0x12dc   :  { %3599 = vsyncpa [#allocation9], 1 }
0x12dd   :  { %3600 = vsyncpa [#allocation4], 1 }
0x12de   :  { %3602 = vsyncpa [#allocation4 + $0x1], 1 }

</bundles_post_ra>
